<compile_context>
chip_gen: v7x
topology: tpu7x:2x2x1
jax: 0.10.0
libtpu: 0.0.40
codegen_flags: <defaults>
</compile_context>

<pallas_src>
import jax
import jax.numpy as jnp
from jax import lax
from jax.experimental import pallas as pl
from jax.experimental.pallas import tpu as pltpu


# ----------------------------------------------------------------------------
# Fused two-layer TLSTM decoder kernel (single invocation, in-kernel time loop)
# ----------------------------------------------------------------------------
def _fused_tlstm_decoder_kernel(xw1_ref,                 # (seq, b, 4H1)
                                h0_ref, c0_ref,          # (b, H1)
                                uall1_w_ref,             # (H1, 4H1)
                                wd1_w_ref, wd1_b_ref,    # (H1, H1), (1, H1)
                                w2in_w_ref,              # (H1, 4H2) fused proj
                                uall2_w_ref,             # (H2, 4H2)
                                b2_ref,                  # (1, 4H2) fused bias
                                wd2_w_ref, wd2_b_ref,    # (H2, H2), (1, H2)
                                out_ref):                # (seq, b, H2)
    seq = xw1_ref.shape[0]
    b = h0_ref.shape[0]
    h1_dim = uall1_w_ref.shape[0]
    h2_dim = uall2_w_ref.shape[0]

    # Weights are tiny at these shapes: load once outside the loop.
    uall1_w = uall1_w_ref[...]
    wd1_w, wd1_b = wd1_w_ref[...], wd1_b_ref[...]
    w2in_w = w2in_w_ref[...]
    uall2_w, b2 = uall2_w_ref[...], b2_ref[...]
    wd2_w, wd2_b = wd2_w_ref[...], wd2_b_ref[...]

    def lstm_gates(preact, c_adj, hdim):
        # One EUP sigmoid pass over the full (b, 4H) vreg, then gate slices.
        sig = jax.nn.sigmoid(preact)
        f = sig[:, 0 * hdim:1 * hdim]
        i = sig[:, 1 * hdim:2 * hdim]
        o = sig[:, 2 * hdim:3 * hdim]
        c_tmp = jnp.tanh(preact[:, 3 * hdim:4 * hdim])
        c_t = f * c_adj + i * c_tmp
        new_h = o * jnp.tanh(c_t)
        return new_h, c_t

    def step(s, carry):
        h1, c1, h2, c2 = carry

        # ---- layer 1 (input stream read in reversed time order == the flip)
        c_st1 = jax.nn.sigmoid(
            jnp.dot(c1, wd1_w, preferred_element_type=jnp.float32) + wd1_b)
        c1_adj = c1 - c_st1            # time diffs are zero -> c_st * t == 0
        pre1 = (xw1_ref[seq - 1 - s]
                + jnp.dot(h1, uall1_w, preferred_element_type=jnp.float32))
        h1_new, c1_new = lstm_gates(pre1, c1_adj, h1_dim)

        # ---- layer 2 (layer-1 output projection folded into w2in_w / b2)
        c_st2 = jax.nn.sigmoid(
            jnp.dot(c2, wd2_w, preferred_element_type=jnp.float32) + wd2_b)
        c2_adj = c2 - c_st2
        pre2 = (jnp.dot(h1_new, w2in_w, preferred_element_type=jnp.float32)
                + jnp.dot(h2, uall2_w, preferred_element_type=jnp.float32)
                + b2)
        h2_new, c2_new = lstm_gates(pre2, c2_adj, h2_dim)

        out_ref[s] = h2_new            # VMEM store; one HBM writeback at end
        return (h1_new, c1_new, h2_new, c2_new)

    init = (h0_ref[...], c0_ref[...],
            jnp.zeros((b, h2_dim), jnp.float32),
            jnp.zeros((b, h2_dim), jnp.float32))
    lax.fori_loop(0, seq, step, init, unroll=True)


def _run_fused_decoder(xw1, h0, c0, uall1_w, wd1_w, wd1_b,
                       w2in_w, uall2_w, b2, wd2_w, wd2_b):
    seq, b, _ = xw1.shape
    h2_dim = uall2_w.shape[0]

    def full_spec(a):
        nd = a.ndim
        return pl.BlockSpec(a.shape, lambda i, _nd=nd: (0,) * _nd)

    args = (xw1, h0, c0, uall1_w, wd1_w, wd1_b, w2in_w, uall2_w, b2,
            wd2_w, wd2_b)

    return pl.pallas_call(
        _fused_tlstm_decoder_kernel,
        out_shape=jax.ShapeDtypeStruct((seq, b, h2_dim), jnp.float32),
        grid_spec=pltpu.PrefetchScalarGridSpec(
            num_scalar_prefetch=0,
            grid=(1,),
            in_specs=[full_spec(a) for a in args],
            out_specs=pl.BlockSpec((seq, b, h2_dim), lambda i: (0, 0, 0)),
        ),
        compiler_params=pltpu.CompilerParams(
            dimension_semantics=("arbitrary",)),
    )(*args)


# ----------------------------------------------------------------------------
# Parameter init (mimics nn.Linear init; weights stored transposed (in, out))
# ----------------------------------------------------------------------------
def init_tlstm_params(key, input_dim, hidden_dim, output_dim):
    ks = jax.random.split(key, 8)

    def lin(kw, kb, fan_in, fan_out):
        bound = 1.0 / jnp.sqrt(jnp.float32(fan_in))
        w = jax.random.uniform(kw, (fan_in, fan_out), jnp.float32, -bound, bound)
        b = jax.random.uniform(kb, (1, fan_out), jnp.float32, -bound, bound)
        return w, b

    wall_w, wall_b = lin(ks[0], ks[1], input_dim, hidden_dim * 4)
    uall_w, uall_b = lin(ks[2], ks[3], hidden_dim, hidden_dim * 4)
    wd_w, wd_b = lin(ks[4], ks[5], hidden_dim, hidden_dim)
    out_w, out_b = lin(ks[6], ks[7], hidden_dim, output_dim)
    return dict(wall_w=wall_w, wall_b=wall_b,
                uall_w=uall_w, uall_b=uall_b,
                wd_w=wd_w, wd_b=wd_b,
                out_w=out_w, out_b=out_b)


def _round_up(n, m):
    return -(-n // m) * m


# ----------------------------------------------------------------------------
# TLSTM_Decoder.forward
# ----------------------------------------------------------------------------
@jax.jit
def tlstm_decoder_forward(x, time_diffs, encoded_h, encoded_c,
                          params1, params2):
    """x: (b, seq, in_channels); encoded_h/c: (b, hidden_dim1).
    Returns outputs2: (b, seq, decoded_dim)."""
    b, seq, _ = x.shape
    del time_diffs  # zeroed by the reference module -> t path dropped

    # Pad batch to a multiple of 8 f32 sublanes; padded rows sliced off below.
    b_pad = _round_up(b, 8)
    pad = b_pad - b
    x_p = jnp.pad(x.astype(jnp.float32), ((0, pad), (0, 0), (0, 0)))
    h0 = jnp.pad(encoded_h.astype(jnp.float32), ((0, pad), (0, 0)))
    c0 = jnp.pad(encoded_c.astype(jnp.float32), ((0, pad), (0, 0)))

    x_tm = jnp.transpose(x_p, (1, 0, 2))                    # (seq, b_pad, Din)

    # Hoisted layer-1 input projection; W_all1 and U_all1 biases pre-summed.
    xw1 = (jnp.einsum("sbi,ih->sbh", x_tm, params1["wall_w"],
                      preferred_element_type=jnp.float32)
           + params1["wall_b"] + params1["uall_b"])         # (seq, b_pad, 4H1)

    # Fold layer-1 output projection into layer-2 input projection.
    w2in_w = jnp.dot(params1["out_w"], params2["wall_w"],
                     preferred_element_type=jnp.float32)    # (H1, 4H2)
    b2 = (jnp.dot(params1["out_b"], params2["wall_w"],
                  preferred_element_type=jnp.float32)
          + params2["wall_b"] + params2["uall_b"])          # (1, 4H2)

    h2_tm = _run_fused_decoder(
        xw1, h0, c0,
        params1["uall_w"], params1["wd_w"], params1["wd_b"],
        w2in_w, params2["uall_w"], b2,
        params2["wd_w"], params2["wd_b"])                   # (seq, b_pad, H2)

    # Hoisted layer-2 output projection: one matmul over all timesteps.
    out_tm = (jnp.einsum("sbh,hd->sbd", h2_tm, params2["out_w"],
                         preferred_element_type=jnp.float32)
              + params2["out_b"])                           # (seq, b_pad, Dout)
    return jnp.transpose(out_tm, (1, 0, 2))[:b]             # (b, seq, Dout)


# ----------------------------------------------------------------------------
# Pure-JAX reference (mirrors the PyTorch module step-by-step) for validation
# ----------------------------------------------------------------------------
def _tlstm_layer_ref(x, t, h, c, p):
    b, seq, _ = x.shape
    H = p["uall_w"].shape[0]
    outs = []
    for s in range(seq):
        xs = x[:, s, :]
        ts = t[:, s][:, None]
        c_st = jax.nn.sigmoid(c @ p["wd_w"] + p["wd_b"])
        c = c - c_st + c_st * ts
        pre = (xs @ p["wall_w"] + p["wall_b"]
               + h @ p["uall_w"] + p["uall_b"])
        f = jax.nn.sigmoid(pre[:, 0 * H:1 * H])
        i = jax.nn.sigmoid(pre[:, 1 * H:2 * H])
        o = jax.nn.sigmoid(pre[:, 2 * H:3 * H])
        g = jnp.tanh(pre[:, 3 * H:4 * H])
        c = f * c + i * g
        h = o * jnp.tanh(c)
        outs.append(h @ p["out_w"] + p["out_b"])
    return jnp.stack(outs, axis=1)


def tlstm_decoder_reference(x, time_diffs, encoded_h, encoded_c, p1, p2):
    td = jnp.zeros_like(time_diffs)
    out1 = _tlstm_layer_ref(jnp.flip(x, axis=1), td, encoded_h, encoded_c, p1)
    b = x.shape[0]
    h2 = jnp.zeros((b, p2["uall_w"].shape[0]), jnp.float32)
    c2 = jnp.zeros_like(h2)
    return _tlstm_layer_ref(out1, td, h2, c2, p2)


if __name__ == "__main__":
    batch = 2
    seq = 8
    in_channels = 4
    hidden_dim1 = 32
    hidden_dim2 = 32
    output_dim1 = 16
    decoded_dim = 4

    key = jax.random.PRNGKey(0)
    k_x, k_t, k_h, k_c, k_p1, k_p2 = jax.random.split(key, 6)

    x = jax.random.normal(k_x, (batch, seq, in_channels), jnp.float32)
    time_diffs = jax.random.uniform(k_t, (batch, seq), jnp.float32)
    encoded_h = jax.random.normal(k_h, (batch, hidden_dim1), jnp.float32)
    encoded_c = jax.random.normal(k_c, (batch, hidden_dim1), jnp.float32)

    params1 = init_tlstm_params(k_p1, in_channels, hidden_dim1, output_dim1)
    params2 = init_tlstm_params(k_p2, output_dim1, hidden_dim2, decoded_dim)

    out = tlstm_decoder_forward(x, time_diffs, encoded_h, encoded_c,
                                params1, params2)
    out = jax.block_until_ready(out)
    assert out.shape == (batch, seq, decoded_dim), out.shape

    ref = tlstm_decoder_reference(x, time_diffs, encoded_h, encoded_c,
                                  params1, params2)
    ref = jax.block_until_ready(ref)
    assert jnp.allclose(out, ref, rtol=1e-4, atol=1e-4), (
        "max abs err = %g" % float(jnp.max(jnp.abs(out - ref))))

    print("KERNEL_OK")
</pallas_src>

<mosaic_0001>
module attributes {stable_mosaic.version = 11 : i64} {
  func.func @_fused_tlstm_decoder_kernel(%arg0: i32, %arg1: memref<8x8x128xf32, #tpu.memory_space<vmem>>, %arg2: memref<8x32xf32, #tpu.memory_space<vmem>>, %arg3: memref<8x32xf32, #tpu.memory_space<vmem>>, %arg4: memref<32x128xf32, #tpu.memory_space<vmem>>, %arg5: memref<32x32xf32, #tpu.memory_space<vmem>>, %arg6: memref<1x32xf32, #tpu.memory_space<vmem>>, %arg7: memref<32x128xf32, #tpu.memory_space<vmem>>, %arg8: memref<32x128xf32, #tpu.memory_space<vmem>>, %arg9: memref<1x128xf32, #tpu.memory_space<vmem>>, %arg10: memref<32x32xf32, #tpu.memory_space<vmem>>, %arg11: memref<1x32xf32, #tpu.memory_space<vmem>>, %arg12: memref<8x8x32xf32, #tpu.memory_space<vmem>>) attributes {dimension_semantics = [#tpu.dimension_semantics<arbitrary>], iteration_bounds = array<i64: 1>, scalar_prefetch = 0 : i64, scratch_operands = 0 : i64, tpu.core_type = #tpu.core_type<tc>, window_params = [{pipeline_mode = #tpu.pipeline_mode<synchronous>, transform_indices = @transform_0, window_bounds = array<i64: 8, 8, 128>}, {pipeline_mode = #tpu.pipeline_mode<synchronous>, transform_indices = @transform_1, window_bounds = array<i64: 8, 32>}, {pipeline_mode = #tpu.pipeline_mode<synchronous>, transform_indices = @transform_2, window_bounds = array<i64: 8, 32>}, {pipeline_mode = #tpu.pipeline_mode<synchronous>, transform_indices = @transform_3, window_bounds = array<i64: 32, 128>}, {pipeline_mode = #tpu.pipeline_mode<synchronous>, transform_indices = @transform_4, window_bounds = array<i64: 32, 32>}, {pipeline_mode = #tpu.pipeline_mode<synchronous>, transform_indices = @transform_5, window_bounds = array<i64: 1, 32>}, {pipeline_mode = #tpu.pipeline_mode<synchronous>, transform_indices = @transform_6, window_bounds = array<i64: 32, 128>}, {pipeline_mode = #tpu.pipeline_mode<synchronous>, transform_indices = @transform_7, window_bounds = array<i64: 32, 128>}, {pipeline_mode = #tpu.pipeline_mode<synchronous>, transform_indices = @transform_8, window_bounds = array<i64: 1, 128>}, {pipeline_mode = #tpu.pipeline_mode<synchronous>, transform_indices = @transform_9, window_bounds = array<i64: 32, 32>}, {pipeline_mode = #tpu.pipeline_mode<synchronous>, transform_indices = @transform_10, window_bounds = array<i64: 1, 32>}, {pipeline_mode = #tpu.pipeline_mode<synchronous>, transform_indices = @transform_11, window_bounds = array<i64: 8, 8, 32>}]} {
    %c0 = arith.constant 0 : index
    %c0_0 = arith.constant 0 : index
    %0 = vector.load %arg4[%c0, %c0_0] : memref<32x128xf32, #tpu.memory_space<vmem>>, vector<32x128xf32>
    %c0_1 = arith.constant 0 : index
    %c0_2 = arith.constant 0 : index
    %1 = vector.load %arg5[%c0_1, %c0_2] : memref<32x32xf32, #tpu.memory_space<vmem>>, vector<32x32xf32>
    %c0_3 = arith.constant 0 : index
    %c0_4 = arith.constant 0 : index
    %2 = vector.load %arg6[%c0_3, %c0_4] : memref<1x32xf32, #tpu.memory_space<vmem>>, vector<1x32xf32>
    %c0_5 = arith.constant 0 : index
    %c0_6 = arith.constant 0 : index
    %3 = vector.load %arg7[%c0_5, %c0_6] : memref<32x128xf32, #tpu.memory_space<vmem>>, vector<32x128xf32>
    %c0_7 = arith.constant 0 : index
    %c0_8 = arith.constant 0 : index
    %4 = vector.load %arg8[%c0_7, %c0_8] : memref<32x128xf32, #tpu.memory_space<vmem>>, vector<32x128xf32>
    %c0_9 = arith.constant 0 : index
    %c0_10 = arith.constant 0 : index
    %5 = vector.load %arg9[%c0_9, %c0_10] : memref<1x128xf32, #tpu.memory_space<vmem>>, vector<1x128xf32>
    %c0_11 = arith.constant 0 : index
    %c0_12 = arith.constant 0 : index
    %6 = vector.load %arg10[%c0_11, %c0_12] : memref<32x32xf32, #tpu.memory_space<vmem>>, vector<32x32xf32>
    %c0_13 = arith.constant 0 : index
    %c0_14 = arith.constant 0 : index
    %7 = vector.load %arg11[%c0_13, %c0_14] : memref<1x32xf32, #tpu.memory_space<vmem>>, vector<1x32xf32>
    %c0_15 = arith.constant 0 : index
    %c0_16 = arith.constant 0 : index
    %8 = vector.load %arg2[%c0_15, %c0_16] : memref<8x32xf32, #tpu.memory_space<vmem>>, vector<8x32xf32>
    %c0_17 = arith.constant 0 : index
    %c0_18 = arith.constant 0 : index
    %9 = vector.load %arg3[%c0_17, %c0_18] : memref<8x32xf32, #tpu.memory_space<vmem>>, vector<8x32xf32>
    %cst = arith.constant 0.000000e+00 : f32
    %10 = vector.broadcast %cst : f32 to vector<8x32xf32>
    %cst_19 = arith.constant 0.000000e+00 : f32
    %11 = vector.broadcast %cst_19 : f32 to vector<8x32xf32>
    %c0_i32 = arith.constant 0 : i32
    %cst_20 = arith.constant dense<0.000000e+00> : vector<8x32xf32>
    %12 = tpu.matmul %9, %1, %cst_20 {dimension_numbers = #tpu.dot_dimension_numbers<[1], [0], [0], [1], [0, 0, 1, 1], [], []>} : vector<8x32xf32>, vector<32x32xf32>, vector<8x32xf32> -> vector<8x32xf32>
    %13 = vector.broadcast %2 : vector<1x32xf32> to vector<8x32xf32>
    %14 = arith.addf %12, %13 : vector<8x32xf32>
    %15 = arith.negf %14 : vector<8x32xf32>
    %16 = math.exp %15 : vector<8x32xf32>
    %cst_21 = arith.constant 1.000000e+00 : f32
    %17 = vector.broadcast %cst_21 : f32 to vector<8x32xf32>
    %18 = arith.addf %17, %16 : vector<8x32xf32>
    %19 = arith.divf %17, %18 : vector<8x32xf32>
    %20 = arith.subf %9, %19 : vector<8x32xf32>
    %c7_i32 = arith.constant 7 : i32
    %21 = arith.subi %c7_i32, %c0_i32 : i32
    %22 = arith.index_cast %21 : i32 to index
    %c0_22 = arith.constant 0 : index
    %c0_23 = arith.constant 0 : index
    %23 = vector.load %arg1[%22, %c0_22, %c0_23] : memref<8x8x128xf32, #tpu.memory_space<vmem>>, vector<1x8x128xf32>
    %24 = vector.shape_cast %23 : vector<1x8x128xf32> to vector<8x128xf32>
    %cst_24 = arith.constant dense<0.000000e+00> : vector<8x128xf32>
    %25 = tpu.matmul %8, %0, %cst_24 {dimension_numbers = #tpu.dot_dimension_numbers<[1], [0], [0], [1], [0, 0, 1, 1], [], []>} : vector<8x32xf32>, vector<32x128xf32>, vector<8x128xf32> -> vector<8x128xf32>
    %26 = arith.addf %24, %25 : vector<8x128xf32>
    %27 = arith.negf %26 : vector<8x128xf32>
    %28 = math.exp %27 : vector<8x128xf32>
    %cst_25 = arith.constant 1.000000e+00 : f32
    %29 = vector.broadcast %cst_25 : f32 to vector<8x128xf32>
    %30 = arith.addf %29, %28 : vector<8x128xf32>
    %31 = arith.divf %29, %30 : vector<8x128xf32>
    %32 = vector.extract_strided_slice %31 {offsets = [0, 0], sizes = [8, 32], strides = [1, 1]} : vector<8x128xf32> to vector<8x32xf32>
    %33 = vector.extract_strided_slice %31 {offsets = [0, 32], sizes = [8, 32], strides = [1, 1]} : vector<8x128xf32> to vector<8x32xf32>
    %34 = vector.extract_strided_slice %31 {offsets = [0, 64], sizes = [8, 32], strides = [1, 1]} : vector<8x128xf32> to vector<8x32xf32>
    %35 = vector.extract_strided_slice %26 {offsets = [0, 96], sizes = [8, 32], strides = [1, 1]} : vector<8x128xf32> to vector<8x32xf32>
    %36 = math.tanh %35 : vector<8x32xf32>
    %37 = arith.mulf %32, %20 : vector<8x32xf32>
    %38 = arith.mulf %33, %36 : vector<8x32xf32>
    %39 = arith.addf %37, %38 : vector<8x32xf32>
    %40 = math.tanh %39 : vector<8x32xf32>
    %41 = arith.mulf %34, %40 : vector<8x32xf32>
    %cst_26 = arith.constant dense<0.000000e+00> : vector<8x32xf32>
    %42 = tpu.matmul %11, %6, %cst_26 {dimension_numbers = #tpu.dot_dimension_numbers<[1], [0], [0], [1], [0, 0, 1, 1], [], []>} : vector<8x32xf32>, vector<32x32xf32>, vector<8x32xf32> -> vector<8x32xf32>
    %43 = vector.broadcast %7 : vector<1x32xf32> to vector<8x32xf32>
    %44 = arith.addf %42, %43 : vector<8x32xf32>
    %45 = arith.negf %44 : vector<8x32xf32>
    %46 = math.exp %45 : vector<8x32xf32>
    %cst_27 = arith.constant 1.000000e+00 : f32
    %47 = vector.broadcast %cst_27 : f32 to vector<8x32xf32>
    %48 = arith.addf %47, %46 : vector<8x32xf32>
    %49 = arith.divf %47, %48 : vector<8x32xf32>
    %50 = arith.subf %11, %49 : vector<8x32xf32>
    %cst_28 = arith.constant dense<0.000000e+00> : vector<8x128xf32>
    %51 = tpu.matmul %41, %3, %cst_28 {dimension_numbers = #tpu.dot_dimension_numbers<[1], [0], [0], [1], [0, 0, 1, 1], [], []>} : vector<8x32xf32>, vector<32x128xf32>, vector<8x128xf32> -> vector<8x128xf32>
    %cst_29 = arith.constant dense<0.000000e+00> : vector<8x128xf32>
    %52 = tpu.matmul %10, %4, %cst_29 {dimension_numbers = #tpu.dot_dimension_numbers<[1], [0], [0], [1], [0, 0, 1, 1], [], []>} : vector<8x32xf32>, vector<32x128xf32>, vector<8x128xf32> -> vector<8x128xf32>
    %53 = arith.addf %51, %52 : vector<8x128xf32>
    %54 = vector.broadcast %5 : vector<1x128xf32> to vector<8x128xf32>
    %55 = arith.addf %53, %54 : vector<8x128xf32>
    %56 = arith.negf %55 : vector<8x128xf32>
    %57 = math.exp %56 : vector<8x128xf32>
    %cst_30 = arith.constant 1.000000e+00 : f32
    %58 = vector.broadcast %cst_30 : f32 to vector<8x128xf32>
    %59 = arith.addf %58, %57 : vector<8x128xf32>
    %60 = arith.divf %58, %59 : vector<8x128xf32>
    %61 = vector.extract_strided_slice %60 {offsets = [0, 0], sizes = [8, 32], strides = [1, 1]} : vector<8x128xf32> to vector<8x32xf32>
    %62 = vector.extract_strided_slice %60 {offsets = [0, 32], sizes = [8, 32], strides = [1, 1]} : vector<8x128xf32> to vector<8x32xf32>
    %63 = vector.extract_strided_slice %60 {offsets = [0, 64], sizes = [8, 32], strides = [1, 1]} : vector<8x128xf32> to vector<8x32xf32>
    %64 = vector.extract_strided_slice %55 {offsets = [0, 96], sizes = [8, 32], strides = [1, 1]} : vector<8x128xf32> to vector<8x32xf32>
    %65 = math.tanh %64 : vector<8x32xf32>
    %66 = arith.mulf %61, %50 : vector<8x32xf32>
    %67 = arith.mulf %62, %65 : vector<8x32xf32>
    %68 = arith.addf %66, %67 : vector<8x32xf32>
    %69 = math.tanh %68 : vector<8x32xf32>
    %70 = arith.mulf %63, %69 : vector<8x32xf32>
    %71 = arith.index_cast %c0_i32 : i32 to index
    %c0_31 = arith.constant 0 : index
    %c0_32 = arith.constant 0 : index
    %72 = vector.load %arg12[%71, %c0_31, %c0_32] : memref<8x8x32xf32, #tpu.memory_space<vmem>>, vector<1x8x32xf32>
    %73 = vector.shape_cast %72 : vector<1x8x32xf32> to vector<8x32xf32>
    %74 = vector.shape_cast %70 : vector<8x32xf32> to vector<1x8x32xf32>
    tpu.vector_store %arg12[%71, %c0_31, %c0_32], %74 {strides = array<i32>} : memref<8x8x32xf32, #tpu.memory_space<vmem>>, vector<1x8x32xf32>,
    %c1_i32 = arith.constant 1 : i32
    %cst_33 = arith.constant dense<0.000000e+00> : vector<8x32xf32>
    %75 = tpu.matmul %39, %1, %cst_33 {dimension_numbers = #tpu.dot_dimension_numbers<[1], [0], [0], [1], [0, 0, 1, 1], [], []>} : vector<8x32xf32>, vector<32x32xf32>, vector<8x32xf32> -> vector<8x32xf32>
    %76 = vector.broadcast %2 : vector<1x32xf32> to vector<8x32xf32>
    %77 = arith.addf %75, %76 : vector<8x32xf32>
    %78 = arith.negf %77 : vector<8x32xf32>
    %79 = math.exp %78 : vector<8x32xf32>
    %cst_34 = arith.constant 1.000000e+00 : f32
    %80 = vector.broadcast %cst_34 : f32 to vector<8x32xf32>
    %81 = arith.addf %80, %79 : vector<8x32xf32>
    %82 = arith.divf %80, %81 : vector<8x32xf32>
    %83 = arith.subf %39, %82 : vector<8x32xf32>
    %c7_i32_35 = arith.constant 7 : i32
    %84 = arith.subi %c7_i32_35, %c1_i32 : i32
    %85 = arith.index_cast %84 : i32 to index
    %c0_36 = arith.constant 0 : index
    %c0_37 = arith.constant 0 : index
    %86 = vector.load %arg1[%85, %c0_36, %c0_37] : memref<8x8x128xf32, #tpu.memory_space<vmem>>, vector<1x8x128xf32>
    %87 = vector.shape_cast %86 : vector<1x8x128xf32> to vector<8x128xf32>
    %cst_38 = arith.constant dense<0.000000e+00> : vector<8x128xf32>
    %88 = tpu.matmul %41, %0, %cst_38 {dimension_numbers = #tpu.dot_dimension_numbers<[1], [0], [0], [1], [0, 0, 1, 1], [], []>} : vector<8x32xf32>, vector<32x128xf32>, vector<8x128xf32> -> vector<8x128xf32>
    %89 = arith.addf %87, %88 : vector<8x128xf32>
    %90 = arith.negf %89 : vector<8x128xf32>
    %91 = math.exp %90 : vector<8x128xf32>
    %cst_39 = arith.constant 1.000000e+00 : f32
    %92 = vector.broadcast %cst_39 : f32 to vector<8x128xf32>
    %93 = arith.addf %92, %91 : vector<8x128xf32>
    %94 = arith.divf %92, %93 : vector<8x128xf32>
    %95 = vector.extract_strided_slice %94 {offsets = [0, 0], sizes = [8, 32], strides = [1, 1]} : vector<8x128xf32> to vector<8x32xf32>
    %96 = vector.extract_strided_slice %94 {offsets = [0, 32], sizes = [8, 32], strides = [1, 1]} : vector<8x128xf32> to vector<8x32xf32>
    %97 = vector.extract_strided_slice %94 {offsets = [0, 64], sizes = [8, 32], strides = [1, 1]} : vector<8x128xf32> to vector<8x32xf32>
    %98 = vector.extract_strided_slice %89 {offsets = [0, 96], sizes = [8, 32], strides = [1, 1]} : vector<8x128xf32> to vector<8x32xf32>
    %99 = math.tanh %98 : vector<8x32xf32>
    %100 = arith.mulf %95, %83 : vector<8x32xf32>
    %101 = arith.mulf %96, %99 : vector<8x32xf32>
    %102 = arith.addf %100, %101 : vector<8x32xf32>
    %103 = math.tanh %102 : vector<8x32xf32>
    %104 = arith.mulf %97, %103 : vector<8x32xf32>
    %cst_40 = arith.constant dense<0.000000e+00> : vector<8x32xf32>
    %105 = tpu.matmul %68, %6, %cst_40 {dimension_numbers = #tpu.dot_dimension_numbers<[1], [0], [0], [1], [0, 0, 1, 1], [], []>} : vector<8x32xf32>, vector<32x32xf32>, vector<8x32xf32> -> vector<8x32xf32>
    %106 = vector.broadcast %7 : vector<1x32xf32> to vector<8x32xf32>
    %107 = arith.addf %105, %106 : vector<8x32xf32>
    %108 = arith.negf %107 : vector<8x32xf32>
    %109 = math.exp %108 : vector<8x32xf32>
    %cst_41 = arith.constant 1.000000e+00 : f32
    %110 = vector.broadcast %cst_41 : f32 to vector<8x32xf32>
    %111 = arith.addf %110, %109 : vector<8x32xf32>
    %112 = arith.divf %110, %111 : vector<8x32xf32>
    %113 = arith.subf %68, %112 : vector<8x32xf32>
    %cst_42 = arith.constant dense<0.000000e+00> : vector<8x128xf32>
    %114 = tpu.matmul %104, %3, %cst_42 {dimension_numbers = #tpu.dot_dimension_numbers<[1], [0], [0], [1], [0, 0, 1, 1], [], []>} : vector<8x32xf32>, vector<32x128xf32>, vector<8x128xf32> -> vector<8x128xf32>
    %cst_43 = arith.constant dense<0.000000e+00> : vector<8x128xf32>
    %115 = tpu.matmul %70, %4, %cst_43 {dimension_numbers = #tpu.dot_dimension_numbers<[1], [0], [0], [1], [0, 0, 1, 1], [], []>} : vector<8x32xf32>, vector<32x128xf32>, vector<8x128xf32> -> vector<8x128xf32>
    %116 = arith.addf %114, %115 : vector<8x128xf32>
    %117 = vector.broadcast %5 : vector<1x128xf32> to vector<8x128xf32>
    %118 = arith.addf %116, %117 : vector<8x128xf32>
    %119 = arith.negf %118 : vector<8x128xf32>
    %120 = math.exp %119 : vector<8x128xf32>
    %cst_44 = arith.constant 1.000000e+00 : f32
    %121 = vector.broadcast %cst_44 : f32 to vector<8x128xf32>
    %122 = arith.addf %121, %120 : vector<8x128xf32>
    %123 = arith.divf %121, %122 : vector<8x128xf32>
    %124 = vector.extract_strided_slice %123 {offsets = [0, 0], sizes = [8, 32], strides = [1, 1]} : vector<8x128xf32> to vector<8x32xf32>
    %125 = vector.extract_strided_slice %123 {offsets = [0, 32], sizes = [8, 32], strides = [1, 1]} : vector<8x128xf32> to vector<8x32xf32>
    %126 = vector.extract_strided_slice %123 {offsets = [0, 64], sizes = [8, 32], strides = [1, 1]} : vector<8x128xf32> to vector<8x32xf32>
    %127 = vector.extract_strided_slice %118 {offsets = [0, 96], sizes = [8, 32], strides = [1, 1]} : vector<8x128xf32> to vector<8x32xf32>
    %128 = math.tanh %127 : vector<8x32xf32>
    %129 = arith.mulf %124, %113 : vector<8x32xf32>
    %130 = arith.mulf %125, %128 : vector<8x32xf32>
    %131 = arith.addf %129, %130 : vector<8x32xf32>
    %132 = math.tanh %131 : vector<8x32xf32>
    %133 = arith.mulf %126, %132 : vector<8x32xf32>
    %134 = arith.index_cast %c1_i32 : i32 to index
    %c0_45 = arith.constant 0 : index
    %c0_46 = arith.constant 0 : index
    %135 = vector.load %arg12[%134, %c0_45, %c0_46] : memref<8x8x32xf32, #tpu.memory_space<vmem>>, vector<1x8x32xf32>
    %136 = vector.shape_cast %135 : vector<1x8x32xf32> to vector<8x32xf32>
    %137 = vector.shape_cast %133 : vector<8x32xf32> to vector<1x8x32xf32>
    tpu.vector_store %arg12[%134, %c0_45, %c0_46], %137 {strides = array<i32>} : memref<8x8x32xf32, #tpu.memory_space<vmem>>, vector<1x8x32xf32>,
    %c2_i32 = arith.constant 2 : i32
    %cst_47 = arith.constant dense<0.000000e+00> : vector<8x32xf32>
    %138 = tpu.matmul %102, %1, %cst_47 {dimension_numbers = #tpu.dot_dimension_numbers<[1], [0], [0], [1], [0, 0, 1, 1], [], []>} : vector<8x32xf32>, vector<32x32xf32>, vector<8x32xf32> -> vector<8x32xf32>
    %139 = vector.broadcast %2 : vector<1x32xf32> to vector<8x32xf32>
    %140 = arith.addf %138, %139 : vector<8x32xf32>
    %141 = arith.negf %140 : vector<8x32xf32>
    %142 = math.exp %141 : vector<8x32xf32>
    %cst_48 = arith.constant 1.000000e+00 : f32
    %143 = vector.broadcast %cst_48 : f32 to vector<8x32xf32>
    %144 = arith.addf %143, %142 : vector<8x32xf32>
    %145 = arith.divf %143, %144 : vector<8x32xf32>
    %146 = arith.subf %102, %145 : vector<8x32xf32>
    %c7_i32_49 = arith.constant 7 : i32
    %147 = arith.subi %c7_i32_49, %c2_i32 : i32
    %148 = arith.index_cast %147 : i32 to index
    %c0_50 = arith.constant 0 : index
    %c0_51 = arith.constant 0 : index
    %149 = vector.load %arg1[%148, %c0_50, %c0_51] : memref<8x8x128xf32, #tpu.memory_space<vmem>>, vector<1x8x128xf32>
    %150 = vector.shape_cast %149 : vector<1x8x128xf32> to vector<8x128xf32>
    %cst_52 = arith.constant dense<0.000000e+00> : vector<8x128xf32>
    %151 = tpu.matmul %104, %0, %cst_52 {dimension_numbers = #tpu.dot_dimension_numbers<[1], [0], [0], [1], [0, 0, 1, 1], [], []>} : vector<8x32xf32>, vector<32x128xf32>, vector<8x128xf32> -> vector<8x128xf32>
    %152 = arith.addf %150, %151 : vector<8x128xf32>
    %153 = arith.negf %152 : vector<8x128xf32>
    %154 = math.exp %153 : vector<8x128xf32>
    %cst_53 = arith.constant 1.000000e+00 : f32
    %155 = vector.broadcast %cst_53 : f32 to vector<8x128xf32>
    %156 = arith.addf %155, %154 : vector<8x128xf32>
    %157 = arith.divf %155, %156 : vector<8x128xf32>
    %158 = vector.extract_strided_slice %157 {offsets = [0, 0], sizes = [8, 32], strides = [1, 1]} : vector<8x128xf32> to vector<8x32xf32>
    %159 = vector.extract_strided_slice %157 {offsets = [0, 32], sizes = [8, 32], strides = [1, 1]} : vector<8x128xf32> to vector<8x32xf32>
    %160 = vector.extract_strided_slice %157 {offsets = [0, 64], sizes = [8, 32], strides = [1, 1]} : vector<8x128xf32> to vector<8x32xf32>
    %161 = vector.extract_strided_slice %152 {offsets = [0, 96], sizes = [8, 32], strides = [1, 1]} : vector<8x128xf32> to vector<8x32xf32>
    %162 = math.tanh %161 : vector<8x32xf32>
    %163 = arith.mulf %158, %146 : vector<8x32xf32>
    %164 = arith.mulf %159, %162 : vector<8x32xf32>
    %165 = arith.addf %163, %164 : vector<8x32xf32>
    %166 = math.tanh %165 : vector<8x32xf32>
    %167 = arith.mulf %160, %166 : vector<8x32xf32>
    %cst_54 = arith.constant dense<0.000000e+00> : vector<8x32xf32>
    %168 = tpu.matmul %131, %6, %cst_54 {dimension_numbers = #tpu.dot_dimension_numbers<[1], [0], [0], [1], [0, 0, 1, 1], [], []>} : vector<8x32xf32>, vector<32x32xf32>, vector<8x32xf32> -> vector<8x32xf32>
    %169 = vector.broadcast %7 : vector<1x32xf32> to vector<8x32xf32>
    %170 = arith.addf %168, %169 : vector<8x32xf32>
    %171 = arith.negf %170 : vector<8x32xf32>
    %172 = math.exp %171 : vector<8x32xf32>
    %cst_55 = arith.constant 1.000000e+00 : f32
    %173 = vector.broadcast %cst_55 : f32 to vector<8x32xf32>
    %174 = arith.addf %173, %172 : vector<8x32xf32>
    %175 = arith.divf %173, %174 : vector<8x32xf32>
    %176 = arith.subf %131, %175 : vector<8x32xf32>
    %cst_56 = arith.constant dense<0.000000e+00> : vector<8x128xf32>
    %177 = tpu.matmul %167, %3, %cst_56 {dimension_numbers = #tpu.dot_dimension_numbers<[1], [0], [0], [1], [0, 0, 1, 1], [], []>} : vector<8x32xf32>, vector<32x128xf32>, vector<8x128xf32> -> vector<8x128xf32>
    %cst_57 = arith.constant dense<0.000000e+00> : vector<8x128xf32>
    %178 = tpu.matmul %133, %4, %cst_57 {dimension_numbers = #tpu.dot_dimension_numbers<[1], [0], [0], [1], [0, 0, 1, 1], [], []>} : vector<8x32xf32>, vector<32x128xf32>, vector<8x128xf32> -> vector<8x128xf32>
    %179 = arith.addf %177, %178 : vector<8x128xf32>
    %180 = vector.broadcast %5 : vector<1x128xf32> to vector<8x128xf32>
    %181 = arith.addf %179, %180 : vector<8x128xf32>
    %182 = arith.negf %181 : vector<8x128xf32>
    %183 = math.exp %182 : vector<8x128xf32>
    %cst_58 = arith.constant 1.000000e+00 : f32
    %184 = vector.broadcast %cst_58 : f32 to vector<8x128xf32>
    %185 = arith.addf %184, %183 : vector<8x128xf32>
    %186 = arith.divf %184, %185 : vector<8x128xf32>
    %187 = vector.extract_strided_slice %186 {offsets = [0, 0], sizes = [8, 32], strides = [1, 1]} : vector<8x128xf32> to vector<8x32xf32>
    %188 = vector.extract_strided_slice %186 {offsets = [0, 32], sizes = [8, 32], strides = [1, 1]} : vector<8x128xf32> to vector<8x32xf32>
    %189 = vector.extract_strided_slice %186 {offsets = [0, 64], sizes = [8, 32], strides = [1, 1]} : vector<8x128xf32> to vector<8x32xf32>
    %190 = vector.extract_strided_slice %181 {offsets = [0, 96], sizes = [8, 32], strides = [1, 1]} : vector<8x128xf32> to vector<8x32xf32>
    %191 = math.tanh %190 : vector<8x32xf32>
    %192 = arith.mulf %187, %176 : vector<8x32xf32>
    %193 = arith.mulf %188, %191 : vector<8x32xf32>
    %194 = arith.addf %192, %193 : vector<8x32xf32>
    %195 = math.tanh %194 : vector<8x32xf32>
    %196 = arith.mulf %189, %195 : vector<8x32xf32>
    %197 = arith.index_cast %c2_i32 : i32 to index
    %c0_59 = arith.constant 0 : index
    %c0_60 = arith.constant 0 : index
    %198 = vector.load %arg12[%197, %c0_59, %c0_60] : memref<8x8x32xf32, #tpu.memory_space<vmem>>, vector<1x8x32xf32>
    %199 = vector.shape_cast %198 : vector<1x8x32xf32> to vector<8x32xf32>
    %200 = vector.shape_cast %196 : vector<8x32xf32> to vector<1x8x32xf32>
    tpu.vector_store %arg12[%197, %c0_59, %c0_60], %200 {strides = array<i32>} : memref<8x8x32xf32, #tpu.memory_space<vmem>>, vector<1x8x32xf32>,
    %c3_i32 = arith.constant 3 : i32
    %cst_61 = arith.constant dense<0.000000e+00> : vector<8x32xf32>
    %201 = tpu.matmul %165, %1, %cst_61 {dimension_numbers = #tpu.dot_dimension_numbers<[1], [0], [0], [1], [0, 0, 1, 1], [], []>} : vector<8x32xf32>, vector<32x32xf32>, vector<8x32xf32> -> vector<8x32xf32>
    %202 = vector.broadcast %2 : vector<1x32xf32> to vector<8x32xf32>
    %203 = arith.addf %201, %202 : vector<8x32xf32>
    %204 = arith.negf %203 : vector<8x32xf32>
    %205 = math.exp %204 : vector<8x32xf32>
    %cst_62 = arith.constant 1.000000e+00 : f32
    %206 = vector.broadcast %cst_62 : f32 to vector<8x32xf32>
    %207 = arith.addf %206, %205 : vector<8x32xf32>
    %208 = arith.divf %206, %207 : vector<8x32xf32>
    %209 = arith.subf %165, %208 : vector<8x32xf32>
    %c7_i32_63 = arith.constant 7 : i32
    %210 = arith.subi %c7_i32_63, %c3_i32 : i32
    %211 = arith.index_cast %210 : i32 to index
    %c0_64 = arith.constant 0 : index
    %c0_65 = arith.constant 0 : index
    %212 = vector.load %arg1[%211, %c0_64, %c0_65] : memref<8x8x128xf32, #tpu.memory_space<vmem>>, vector<1x8x128xf32>
    %213 = vector.shape_cast %212 : vector<1x8x128xf32> to vector<8x128xf32>
    %cst_66 = arith.constant dense<0.000000e+00> : vector<8x128xf32>
    %214 = tpu.matmul %167, %0, %cst_66 {dimension_numbers = #tpu.dot_dimension_numbers<[1], [0], [0], [1], [0, 0, 1, 1], [], []>} : vector<8x32xf32>, vector<32x128xf32>, vector<8x128xf32> -> vector<8x128xf32>
    %215 = arith.addf %213, %214 : vector<8x128xf32>
    %216 = arith.negf %215 : vector<8x128xf32>
    %217 = math.exp %216 : vector<8x128xf32>
    %cst_67 = arith.constant 1.000000e+00 : f32
    %218 = vector.broadcast %cst_67 : f32 to vector<8x128xf32>
    %219 = arith.addf %218, %217 : vector<8x128xf32>
    %220 = arith.divf %218, %219 : vector<8x128xf32>
    %221 = vector.extract_strided_slice %220 {offsets = [0, 0], sizes = [8, 32], strides = [1, 1]} : vector<8x128xf32> to vector<8x32xf32>
    %222 = vector.extract_strided_slice %220 {offsets = [0, 32], sizes = [8, 32], strides = [1, 1]} : vector<8x128xf32> to vector<8x32xf32>
    %223 = vector.extract_strided_slice %220 {offsets = [0, 64], sizes = [8, 32], strides = [1, 1]} : vector<8x128xf32> to vector<8x32xf32>
    %224 = vector.extract_strided_slice %215 {offsets = [0, 96], sizes = [8, 32], strides = [1, 1]} : vector<8x128xf32> to vector<8x32xf32>
    %225 = math.tanh %224 : vector<8x32xf32>
    %226 = arith.mulf %221, %209 : vector<8x32xf32>
    %227 = arith.mulf %222, %225 : vector<8x32xf32>
    %228 = arith.addf %226, %227 : vector<8x32xf32>
    %229 = math.tanh %228 : vector<8x32xf32>
    %230 = arith.mulf %223, %229 : vector<8x32xf32>
    %cst_68 = arith.constant dense<0.000000e+00> : vector<8x32xf32>
    %231 = tpu.matmul %194, %6, %cst_68 {dimension_numbers = #tpu.dot_dimension_numbers<[1], [0], [0], [1], [0, 0, 1, 1], [], []>} : vector<8x32xf32>, vector<32x32xf32>, vector<8x32xf32> -> vector<8x32xf32>
    %232 = vector.broadcast %7 : vector<1x32xf32> to vector<8x32xf32>
    %233 = arith.addf %231, %232 : vector<8x32xf32>
    %234 = arith.negf %233 : vector<8x32xf32>
    %235 = math.exp %234 : vector<8x32xf32>
    %cst_69 = arith.constant 1.000000e+00 : f32
    %236 = vector.broadcast %cst_69 : f32 to vector<8x32xf32>
    %237 = arith.addf %236, %235 : vector<8x32xf32>
    %238 = arith.divf %236, %237 : vector<8x32xf32>
    %239 = arith.subf %194, %238 : vector<8x32xf32>
    %cst_70 = arith.constant dense<0.000000e+00> : vector<8x128xf32>
    %240 = tpu.matmul %230, %3, %cst_70 {dimension_numbers = #tpu.dot_dimension_numbers<[1], [0], [0], [1], [0, 0, 1, 1], [], []>} : vector<8x32xf32>, vector<32x128xf32>, vector<8x128xf32> -> vector<8x128xf32>
    %cst_71 = arith.constant dense<0.000000e+00> : vector<8x128xf32>
    %241 = tpu.matmul %196, %4, %cst_71 {dimension_numbers = #tpu.dot_dimension_numbers<[1], [0], [0], [1], [0, 0, 1, 1], [], []>} : vector<8x32xf32>, vector<32x128xf32>, vector<8x128xf32> -> vector<8x128xf32>
    %242 = arith.addf %240, %241 : vector<8x128xf32>
    %243 = vector.broadcast %5 : vector<1x128xf32> to vector<8x128xf32>
    %244 = arith.addf %242, %243 : vector<8x128xf32>
    %245 = arith.negf %244 : vector<8x128xf32>
    %246 = math.exp %245 : vector<8x128xf32>
    %cst_72 = arith.constant 1.000000e+00 : f32
    %247 = vector.broadcast %cst_72 : f32 to vector<8x128xf32>
    %248 = arith.addf %247, %246 : vector<8x128xf32>
    %249 = arith.divf %247, %248 : vector<8x128xf32>
    %250 = vector.extract_strided_slice %249 {offsets = [0, 0], sizes = [8, 32], strides = [1, 1]} : vector<8x128xf32> to vector<8x32xf32>
    %251 = vector.extract_strided_slice %249 {offsets = [0, 32], sizes = [8, 32], strides = [1, 1]} : vector<8x128xf32> to vector<8x32xf32>
    %252 = vector.extract_strided_slice %249 {offsets = [0, 64], sizes = [8, 32], strides = [1, 1]} : vector<8x128xf32> to vector<8x32xf32>
    %253 = vector.extract_strided_slice %244 {offsets = [0, 96], sizes = [8, 32], strides = [1, 1]} : vector<8x128xf32> to vector<8x32xf32>
    %254 = math.tanh %253 : vector<8x32xf32>
    %255 = arith.mulf %250, %239 : vector<8x32xf32>
    %256 = arith.mulf %251, %254 : vector<8x32xf32>
    %257 = arith.addf %255, %256 : vector<8x32xf32>
    %258 = math.tanh %257 : vector<8x32xf32>
    %259 = arith.mulf %252, %258 : vector<8x32xf32>
    %260 = arith.index_cast %c3_i32 : i32 to index
    %c0_73 = arith.constant 0 : index
    %c0_74 = arith.constant 0 : index
    %261 = vector.load %arg12[%260, %c0_73, %c0_74] : memref<8x8x32xf32, #tpu.memory_space<vmem>>, vector<1x8x32xf32>
    %262 = vector.shape_cast %261 : vector<1x8x32xf32> to vector<8x32xf32>
    %263 = vector.shape_cast %259 : vector<8x32xf32> to vector<1x8x32xf32>
    tpu.vector_store %arg12[%260, %c0_73, %c0_74], %263 {strides = array<i32>} : memref<8x8x32xf32, #tpu.memory_space<vmem>>, vector<1x8x32xf32>,
    %c4_i32 = arith.constant 4 : i32
    %cst_75 = arith.constant dense<0.000000e+00> : vector<8x32xf32>
    %264 = tpu.matmul %228, %1, %cst_75 {dimension_numbers = #tpu.dot_dimension_numbers<[1], [0], [0], [1], [0, 0, 1, 1], [], []>} : vector<8x32xf32>, vector<32x32xf32>, vector<8x32xf32> -> vector<8x32xf32>
    %265 = vector.broadcast %2 : vector<1x32xf32> to vector<8x32xf32>
    %266 = arith.addf %264, %265 : vector<8x32xf32>
    %267 = arith.negf %266 : vector<8x32xf32>
    %268 = math.exp %267 : vector<8x32xf32>
    %cst_76 = arith.constant 1.000000e+00 : f32
    %269 = vector.broadcast %cst_76 : f32 to vector<8x32xf32>
    %270 = arith.addf %269, %268 : vector<8x32xf32>
    %271 = arith.divf %269, %270 : vector<8x32xf32>
    %272 = arith.subf %228, %271 : vector<8x32xf32>
    %c7_i32_77 = arith.constant 7 : i32
    %273 = arith.subi %c7_i32_77, %c4_i32 : i32
    %274 = arith.index_cast %273 : i32 to index
    %c0_78 = arith.constant 0 : index
    %c0_79 = arith.constant 0 : index
    %275 = vector.load %arg1[%274, %c0_78, %c0_79] : memref<8x8x128xf32, #tpu.memory_space<vmem>>, vector<1x8x128xf32>
    %276 = vector.shape_cast %275 : vector<1x8x128xf32> to vector<8x128xf32>
    %cst_80 = arith.constant dense<0.000000e+00> : vector<8x128xf32>
    %277 = tpu.matmul %230, %0, %cst_80 {dimension_numbers = #tpu.dot_dimension_numbers<[1], [0], [0], [1], [0, 0, 1, 1], [], []>} : vector<8x32xf32>, vector<32x128xf32>, vector<8x128xf32> -> vector<8x128xf32>
    %278 = arith.addf %276, %277 : vector<8x128xf32>
    %279 = arith.negf %278 : vector<8x128xf32>
    %280 = math.exp %279 : vector<8x128xf32>
    %cst_81 = arith.constant 1.000000e+00 : f32
    %281 = vector.broadcast %cst_81 : f32 to vector<8x128xf32>
    %282 = arith.addf %281, %280 : vector<8x128xf32>
    %283 = arith.divf %281, %282 : vector<8x128xf32>
    %284 = vector.extract_strided_slice %283 {offsets = [0, 0], sizes = [8, 32], strides = [1, 1]} : vector<8x128xf32> to vector<8x32xf32>
    %285 = vector.extract_strided_slice %283 {offsets = [0, 32], sizes = [8, 32], strides = [1, 1]} : vector<8x128xf32> to vector<8x32xf32>
    %286 = vector.extract_strided_slice %283 {offsets = [0, 64], sizes = [8, 32], strides = [1, 1]} : vector<8x128xf32> to vector<8x32xf32>
    %287 = vector.extract_strided_slice %278 {offsets = [0, 96], sizes = [8, 32], strides = [1, 1]} : vector<8x128xf32> to vector<8x32xf32>
    %288 = math.tanh %287 : vector<8x32xf32>
    %289 = arith.mulf %284, %272 : vector<8x32xf32>
    %290 = arith.mulf %285, %288 : vector<8x32xf32>
    %291 = arith.addf %289, %290 : vector<8x32xf32>
    %292 = math.tanh %291 : vector<8x32xf32>
    %293 = arith.mulf %286, %292 : vector<8x32xf32>
    %cst_82 = arith.constant dense<0.000000e+00> : vector<8x32xf32>
    %294 = tpu.matmul %257, %6, %cst_82 {dimension_numbers = #tpu.dot_dimension_numbers<[1], [0], [0], [1], [0, 0, 1, 1], [], []>} : vector<8x32xf32>, vector<32x32xf32>, vector<8x32xf32> -> vector<8x32xf32>
    %295 = vector.broadcast %7 : vector<1x32xf32> to vector<8x32xf32>
    %296 = arith.addf %294, %295 : vector<8x32xf32>
    %297 = arith.negf %296 : vector<8x32xf32>
    %298 = math.exp %297 : vector<8x32xf32>
    %cst_83 = arith.constant 1.000000e+00 : f32
    %299 = vector.broadcast %cst_83 : f32 to vector<8x32xf32>
    %300 = arith.addf %299, %298 : vector<8x32xf32>
    %301 = arith.divf %299, %300 : vector<8x32xf32>
    %302 = arith.subf %257, %301 : vector<8x32xf32>
    %cst_84 = arith.constant dense<0.000000e+00> : vector<8x128xf32>
    %303 = tpu.matmul %293, %3, %cst_84 {dimension_numbers = #tpu.dot_dimension_numbers<[1], [0], [0], [1], [0, 0, 1, 1], [], []>} : vector<8x32xf32>, vector<32x128xf32>, vector<8x128xf32> -> vector<8x128xf32>
    %cst_85 = arith.constant dense<0.000000e+00> : vector<8x128xf32>
    %304 = tpu.matmul %259, %4, %cst_85 {dimension_numbers = #tpu.dot_dimension_numbers<[1], [0], [0], [1], [0, 0, 1, 1], [], []>} : vector<8x32xf32>, vector<32x128xf32>, vector<8x128xf32> -> vector<8x128xf32>
    %305 = arith.addf %303, %304 : vector<8x128xf32>
    %306 = vector.broadcast %5 : vector<1x128xf32> to vector<8x128xf32>
    %307 = arith.addf %305, %306 : vector<8x128xf32>
    %308 = arith.negf %307 : vector<8x128xf32>
    %309 = math.exp %308 : vector<8x128xf32>
    %cst_86 = arith.constant 1.000000e+00 : f32
    %310 = vector.broadcast %cst_86 : f32 to vector<8x128xf32>
    %311 = arith.addf %310, %309 : vector<8x128xf32>
    %312 = arith.divf %310, %311 : vector<8x128xf32>
    %313 = vector.extract_strided_slice %312 {offsets = [0, 0], sizes = [8, 32], strides = [1, 1]} : vector<8x128xf32> to vector<8x32xf32>
    %314 = vector.extract_strided_slice %312 {offsets = [0, 32], sizes = [8, 32], strides = [1, 1]} : vector<8x128xf32> to vector<8x32xf32>
    %315 = vector.extract_strided_slice %312 {offsets = [0, 64], sizes = [8, 32], strides = [1, 1]} : vector<8x128xf32> to vector<8x32xf32>
    %316 = vector.extract_strided_slice %307 {offsets = [0, 96], sizes = [8, 32], strides = [1, 1]} : vector<8x128xf32> to vector<8x32xf32>
    %317 = math.tanh %316 : vector<8x32xf32>
    %318 = arith.mulf %313, %302 : vector<8x32xf32>
    %319 = arith.mulf %314, %317 : vector<8x32xf32>
    %320 = arith.addf %318, %319 : vector<8x32xf32>
    %321 = math.tanh %320 : vector<8x32xf32>
    %322 = arith.mulf %315, %321 : vector<8x32xf32>
    %323 = arith.index_cast %c4_i32 : i32 to index
    %c0_87 = arith.constant 0 : index
    %c0_88 = arith.constant 0 : index
    %324 = vector.load %arg12[%323, %c0_87, %c0_88] : memref<8x8x32xf32, #tpu.memory_space<vmem>>, vector<1x8x32xf32>
    %325 = vector.shape_cast %324 : vector<1x8x32xf32> to vector<8x32xf32>
    %326 = vector.shape_cast %322 : vector<8x32xf32> to vector<1x8x32xf32>
    tpu.vector_store %arg12[%323, %c0_87, %c0_88], %326 {strides = array<i32>} : memref<8x8x32xf32, #tpu.memory_space<vmem>>, vector<1x8x32xf32>,
    %c5_i32 = arith.constant 5 : i32
    %cst_89 = arith.constant dense<0.000000e+00> : vector<8x32xf32>
    %327 = tpu.matmul %291, %1, %cst_89 {dimension_numbers = #tpu.dot_dimension_numbers<[1], [0], [0], [1], [0, 0, 1, 1], [], []>} : vector<8x32xf32>, vector<32x32xf32>, vector<8x32xf32> -> vector<8x32xf32>
    %328 = vector.broadcast %2 : vector<1x32xf32> to vector<8x32xf32>
    %329 = arith.addf %327, %328 : vector<8x32xf32>
    %330 = arith.negf %329 : vector<8x32xf32>
    %331 = math.exp %330 : vector<8x32xf32>
    %cst_90 = arith.constant 1.000000e+00 : f32
    %332 = vector.broadcast %cst_90 : f32 to vector<8x32xf32>
    %333 = arith.addf %332, %331 : vector<8x32xf32>
    %334 = arith.divf %332, %333 : vector<8x32xf32>
    %335 = arith.subf %291, %334 : vector<8x32xf32>
    %c7_i32_91 = arith.constant 7 : i32
    %336 = arith.subi %c7_i32_91, %c5_i32 : i32
    %337 = arith.index_cast %336 : i32 to index
    %c0_92 = arith.constant 0 : index
    %c0_93 = arith.constant 0 : index
    %338 = vector.load %arg1[%337, %c0_92, %c0_93] : memref<8x8x128xf32, #tpu.memory_space<vmem>>, vector<1x8x128xf32>
    %339 = vector.shape_cast %338 : vector<1x8x128xf32> to vector<8x128xf32>
    %cst_94 = arith.constant dense<0.000000e+00> : vector<8x128xf32>
    %340 = tpu.matmul %293, %0, %cst_94 {dimension_numbers = #tpu.dot_dimension_numbers<[1], [0], [0], [1], [0, 0, 1, 1], [], []>} : vector<8x32xf32>, vector<32x128xf32>, vector<8x128xf32> -> vector<8x128xf32>
    %341 = arith.addf %339, %340 : vector<8x128xf32>
    %342 = arith.negf %341 : vector<8x128xf32>
    %343 = math.exp %342 : vector<8x128xf32>
    %cst_95 = arith.constant 1.000000e+00 : f32
    %344 = vector.broadcast %cst_95 : f32 to vector<8x128xf32>
    %345 = arith.addf %344, %343 : vector<8x128xf32>
    %346 = arith.divf %344, %345 : vector<8x128xf32>
    %347 = vector.extract_strided_slice %346 {offsets = [0, 0], sizes = [8, 32], strides = [1, 1]} : vector<8x128xf32> to vector<8x32xf32>
    %348 = vector.extract_strided_slice %346 {offsets = [0, 32], sizes = [8, 32], strides = [1, 1]} : vector<8x128xf32> to vector<8x32xf32>
    %349 = vector.extract_strided_slice %346 {offsets = [0, 64], sizes = [8, 32], strides = [1, 1]} : vector<8x128xf32> to vector<8x32xf32>
    %350 = vector.extract_strided_slice %341 {offsets = [0, 96], sizes = [8, 32], strides = [1, 1]} : vector<8x128xf32> to vector<8x32xf32>
    %351 = math.tanh %350 : vector<8x32xf32>
    %352 = arith.mulf %347, %335 : vector<8x32xf32>
    %353 = arith.mulf %348, %351 : vector<8x32xf32>
    %354 = arith.addf %352, %353 : vector<8x32xf32>
    %355 = math.tanh %354 : vector<8x32xf32>
    %356 = arith.mulf %349, %355 : vector<8x32xf32>
    %cst_96 = arith.constant dense<0.000000e+00> : vector<8x32xf32>
    %357 = tpu.matmul %320, %6, %cst_96 {dimension_numbers = #tpu.dot_dimension_numbers<[1], [0], [0], [1], [0, 0, 1, 1], [], []>} : vector<8x32xf32>, vector<32x32xf32>, vector<8x32xf32> -> vector<8x32xf32>
    %358 = vector.broadcast %7 : vector<1x32xf32> to vector<8x32xf32>
    %359 = arith.addf %357, %358 : vector<8x32xf32>
    %360 = arith.negf %359 : vector<8x32xf32>
    %361 = math.exp %360 : vector<8x32xf32>
    %cst_97 = arith.constant 1.000000e+00 : f32
    %362 = vector.broadcast %cst_97 : f32 to vector<8x32xf32>
    %363 = arith.addf %362, %361 : vector<8x32xf32>
    %364 = arith.divf %362, %363 : vector<8x32xf32>
    %365 = arith.subf %320, %364 : vector<8x32xf32>
    %cst_98 = arith.constant dense<0.000000e+00> : vector<8x128xf32>
    %366 = tpu.matmul %356, %3, %cst_98 {dimension_numbers = #tpu.dot_dimension_numbers<[1], [0], [0], [1], [0, 0, 1, 1], [], []>} : vector<8x32xf32>, vector<32x128xf32>, vector<8x128xf32> -> vector<8x128xf32>
    %cst_99 = arith.constant dense<0.000000e+00> : vector<8x128xf32>
    %367 = tpu.matmul %322, %4, %cst_99 {dimension_numbers = #tpu.dot_dimension_numbers<[1], [0], [0], [1], [0, 0, 1, 1], [], []>} : vector<8x32xf32>, vector<32x128xf32>, vector<8x128xf32> -> vector<8x128xf32>
    %368 = arith.addf %366, %367 : vector<8x128xf32>
    %369 = vector.broadcast %5 : vector<1x128xf32> to vector<8x128xf32>
    %370 = arith.addf %368, %369 : vector<8x128xf32>
    %371 = arith.negf %370 : vector<8x128xf32>
    %372 = math.exp %371 : vector<8x128xf32>
    %cst_100 = arith.constant 1.000000e+00 : f32
    %373 = vector.broadcast %cst_100 : f32 to vector<8x128xf32>
    %374 = arith.addf %373, %372 : vector<8x128xf32>
    %375 = arith.divf %373, %374 : vector<8x128xf32>
    %376 = vector.extract_strided_slice %375 {offsets = [0, 0], sizes = [8, 32], strides = [1, 1]} : vector<8x128xf32> to vector<8x32xf32>
    %377 = vector.extract_strided_slice %375 {offsets = [0, 32], sizes = [8, 32], strides = [1, 1]} : vector<8x128xf32> to vector<8x32xf32>
    %378 = vector.extract_strided_slice %375 {offsets = [0, 64], sizes = [8, 32], strides = [1, 1]} : vector<8x128xf32> to vector<8x32xf32>
    %379 = vector.extract_strided_slice %370 {offsets = [0, 96], sizes = [8, 32], strides = [1, 1]} : vector<8x128xf32> to vector<8x32xf32>
    %380 = math.tanh %379 : vector<8x32xf32>
    %381 = arith.mulf %376, %365 : vector<8x32xf32>
    %382 = arith.mulf %377, %380 : vector<8x32xf32>
    %383 = arith.addf %381, %382 : vector<8x32xf32>
    %384 = math.tanh %383 : vector<8x32xf32>
    %385 = arith.mulf %378, %384 : vector<8x32xf32>
    %386 = arith.index_cast %c5_i32 : i32 to index
    %c0_101 = arith.constant 0 : index
    %c0_102 = arith.constant 0 : index
    %387 = vector.load %arg12[%386, %c0_101, %c0_102] : memref<8x8x32xf32, #tpu.memory_space<vmem>>, vector<1x8x32xf32>
    %388 = vector.shape_cast %387 : vector<1x8x32xf32> to vector<8x32xf32>
    %389 = vector.shape_cast %385 : vector<8x32xf32> to vector<1x8x32xf32>
    tpu.vector_store %arg12[%386, %c0_101, %c0_102], %389 {strides = array<i32>} : memref<8x8x32xf32, #tpu.memory_space<vmem>>, vector<1x8x32xf32>,
    %c6_i32 = arith.constant 6 : i32
    %cst_103 = arith.constant dense<0.000000e+00> : vector<8x32xf32>
    %390 = tpu.matmul %354, %1, %cst_103 {dimension_numbers = #tpu.dot_dimension_numbers<[1], [0], [0], [1], [0, 0, 1, 1], [], []>} : vector<8x32xf32>, vector<32x32xf32>, vector<8x32xf32> -> vector<8x32xf32>
    %391 = vector.broadcast %2 : vector<1x32xf32> to vector<8x32xf32>
    %392 = arith.addf %390, %391 : vector<8x32xf32>
    %393 = arith.negf %392 : vector<8x32xf32>
    %394 = math.exp %393 : vector<8x32xf32>
    %cst_104 = arith.constant 1.000000e+00 : f32
    %395 = vector.broadcast %cst_104 : f32 to vector<8x32xf32>
    %396 = arith.addf %395, %394 : vector<8x32xf32>
    %397 = arith.divf %395, %396 : vector<8x32xf32>
    %398 = arith.subf %354, %397 : vector<8x32xf32>
    %c7_i32_105 = arith.constant 7 : i32
    %399 = arith.subi %c7_i32_105, %c6_i32 : i32
    %400 = arith.index_cast %399 : i32 to index
    %c0_106 = arith.constant 0 : index
    %c0_107 = arith.constant 0 : index
    %401 = vector.load %arg1[%400, %c0_106, %c0_107] : memref<8x8x128xf32, #tpu.memory_space<vmem>>, vector<1x8x128xf32>
    %402 = vector.shape_cast %401 : vector<1x8x128xf32> to vector<8x128xf32>
    %cst_108 = arith.constant dense<0.000000e+00> : vector<8x128xf32>
    %403 = tpu.matmul %356, %0, %cst_108 {dimension_numbers = #tpu.dot_dimension_numbers<[1], [0], [0], [1], [0, 0, 1, 1], [], []>} : vector<8x32xf32>, vector<32x128xf32>, vector<8x128xf32> -> vector<8x128xf32>
    %404 = arith.addf %402, %403 : vector<8x128xf32>
    %405 = arith.negf %404 : vector<8x128xf32>
    %406 = math.exp %405 : vector<8x128xf32>
    %cst_109 = arith.constant 1.000000e+00 : f32
    %407 = vector.broadcast %cst_109 : f32 to vector<8x128xf32>
    %408 = arith.addf %407, %406 : vector<8x128xf32>
    %409 = arith.divf %407, %408 : vector<8x128xf32>
    %410 = vector.extract_strided_slice %409 {offsets = [0, 0], sizes = [8, 32], strides = [1, 1]} : vector<8x128xf32> to vector<8x32xf32>
    %411 = vector.extract_strided_slice %409 {offsets = [0, 32], sizes = [8, 32], strides = [1, 1]} : vector<8x128xf32> to vector<8x32xf32>
    %412 = vector.extract_strided_slice %409 {offsets = [0, 64], sizes = [8, 32], strides = [1, 1]} : vector<8x128xf32> to vector<8x32xf32>
    %413 = vector.extract_strided_slice %404 {offsets = [0, 96], sizes = [8, 32], strides = [1, 1]} : vector<8x128xf32> to vector<8x32xf32>
    %414 = math.tanh %413 : vector<8x32xf32>
    %415 = arith.mulf %410, %398 : vector<8x32xf32>
    %416 = arith.mulf %411, %414 : vector<8x32xf32>
    %417 = arith.addf %415, %416 : vector<8x32xf32>
    %418 = math.tanh %417 : vector<8x32xf32>
    %419 = arith.mulf %412, %418 : vector<8x32xf32>
    %cst_110 = arith.constant dense<0.000000e+00> : vector<8x32xf32>
    %420 = tpu.matmul %383, %6, %cst_110 {dimension_numbers = #tpu.dot_dimension_numbers<[1], [0], [0], [1], [0, 0, 1, 1], [], []>} : vector<8x32xf32>, vector<32x32xf32>, vector<8x32xf32> -> vector<8x32xf32>
    %421 = vector.broadcast %7 : vector<1x32xf32> to vector<8x32xf32>
    %422 = arith.addf %420, %421 : vector<8x32xf32>
    %423 = arith.negf %422 : vector<8x32xf32>
    %424 = math.exp %423 : vector<8x32xf32>
    %cst_111 = arith.constant 1.000000e+00 : f32
    %425 = vector.broadcast %cst_111 : f32 to vector<8x32xf32>
    %426 = arith.addf %425, %424 : vector<8x32xf32>
    %427 = arith.divf %425, %426 : vector<8x32xf32>
    %428 = arith.subf %383, %427 : vector<8x32xf32>
    %cst_112 = arith.constant dense<0.000000e+00> : vector<8x128xf32>
    %429 = tpu.matmul %419, %3, %cst_112 {dimension_numbers = #tpu.dot_dimension_numbers<[1], [0], [0], [1], [0, 0, 1, 1], [], []>} : vector<8x32xf32>, vector<32x128xf32>, vector<8x128xf32> -> vector<8x128xf32>
    %cst_113 = arith.constant dense<0.000000e+00> : vector<8x128xf32>
    %430 = tpu.matmul %385, %4, %cst_113 {dimension_numbers = #tpu.dot_dimension_numbers<[1], [0], [0], [1], [0, 0, 1, 1], [], []>} : vector<8x32xf32>, vector<32x128xf32>, vector<8x128xf32> -> vector<8x128xf32>
    %431 = arith.addf %429, %430 : vector<8x128xf32>
    %432 = vector.broadcast %5 : vector<1x128xf32> to vector<8x128xf32>
    %433 = arith.addf %431, %432 : vector<8x128xf32>
    %434 = arith.negf %433 : vector<8x128xf32>
    %435 = math.exp %434 : vector<8x128xf32>
    %cst_114 = arith.constant 1.000000e+00 : f32
    %436 = vector.broadcast %cst_114 : f32 to vector<8x128xf32>
    %437 = arith.addf %436, %435 : vector<8x128xf32>
    %438 = arith.divf %436, %437 : vector<8x128xf32>
    %439 = vector.extract_strided_slice %438 {offsets = [0, 0], sizes = [8, 32], strides = [1, 1]} : vector<8x128xf32> to vector<8x32xf32>
    %440 = vector.extract_strided_slice %438 {offsets = [0, 32], sizes = [8, 32], strides = [1, 1]} : vector<8x128xf32> to vector<8x32xf32>
    %441 = vector.extract_strided_slice %438 {offsets = [0, 64], sizes = [8, 32], strides = [1, 1]} : vector<8x128xf32> to vector<8x32xf32>
    %442 = vector.extract_strided_slice %433 {offsets = [0, 96], sizes = [8, 32], strides = [1, 1]} : vector<8x128xf32> to vector<8x32xf32>
    %443 = math.tanh %442 : vector<8x32xf32>
    %444 = arith.mulf %439, %428 : vector<8x32xf32>
    %445 = arith.mulf %440, %443 : vector<8x32xf32>
    %446 = arith.addf %444, %445 : vector<8x32xf32>
    %447 = math.tanh %446 : vector<8x32xf32>
    %448 = arith.mulf %441, %447 : vector<8x32xf32>
    %449 = arith.index_cast %c6_i32 : i32 to index
    %c0_115 = arith.constant 0 : index
    %c0_116 = arith.constant 0 : index
    %450 = vector.load %arg12[%449, %c0_115, %c0_116] : memref<8x8x32xf32, #tpu.memory_space<vmem>>, vector<1x8x32xf32>
    %451 = vector.shape_cast %450 : vector<1x8x32xf32> to vector<8x32xf32>
    %452 = vector.shape_cast %448 : vector<8x32xf32> to vector<1x8x32xf32>
    tpu.vector_store %arg12[%449, %c0_115, %c0_116], %452 {strides = array<i32>} : memref<8x8x32xf32, #tpu.memory_space<vmem>>, vector<1x8x32xf32>,
    %c7_i32_117 = arith.constant 7 : i32
    %cst_118 = arith.constant dense<0.000000e+00> : vector<8x32xf32>
    %453 = tpu.matmul %417, %1, %cst_118 {dimension_numbers = #tpu.dot_dimension_numbers<[1], [0], [0], [1], [0, 0, 1, 1], [], []>} : vector<8x32xf32>, vector<32x32xf32>, vector<8x32xf32> -> vector<8x32xf32>
    %454 = vector.broadcast %2 : vector<1x32xf32> to vector<8x32xf32>
    %455 = arith.addf %453, %454 : vector<8x32xf32>
    %456 = arith.negf %455 : vector<8x32xf32>
    %457 = math.exp %456 : vector<8x32xf32>
    %cst_119 = arith.constant 1.000000e+00 : f32
    %458 = vector.broadcast %cst_119 : f32 to vector<8x32xf32>
    %459 = arith.addf %458, %457 : vector<8x32xf32>
    %460 = arith.divf %458, %459 : vector<8x32xf32>
    %461 = arith.subf %417, %460 : vector<8x32xf32>
    %c7_i32_120 = arith.constant 7 : i32
    %462 = arith.subi %c7_i32_120, %c7_i32_117 : i32
    %463 = arith.index_cast %462 : i32 to index
    %c0_121 = arith.constant 0 : index
    %c0_122 = arith.constant 0 : index
    %464 = vector.load %arg1[%463, %c0_121, %c0_122] : memref<8x8x128xf32, #tpu.memory_space<vmem>>, vector<1x8x128xf32>
    %465 = vector.shape_cast %464 : vector<1x8x128xf32> to vector<8x128xf32>
    %cst_123 = arith.constant dense<0.000000e+00> : vector<8x128xf32>
    %466 = tpu.matmul %419, %0, %cst_123 {dimension_numbers = #tpu.dot_dimension_numbers<[1], [0], [0], [1], [0, 0, 1, 1], [], []>} : vector<8x32xf32>, vector<32x128xf32>, vector<8x128xf32> -> vector<8x128xf32>
    %467 = arith.addf %465, %466 : vector<8x128xf32>
    %468 = arith.negf %467 : vector<8x128xf32>
    %469 = math.exp %468 : vector<8x128xf32>
    %cst_124 = arith.constant 1.000000e+00 : f32
    %470 = vector.broadcast %cst_124 : f32 to vector<8x128xf32>
    %471 = arith.addf %470, %469 : vector<8x128xf32>
    %472 = arith.divf %470, %471 : vector<8x128xf32>
    %473 = vector.extract_strided_slice %472 {offsets = [0, 0], sizes = [8, 32], strides = [1, 1]} : vector<8x128xf32> to vector<8x32xf32>
    %474 = vector.extract_strided_slice %472 {offsets = [0, 32], sizes = [8, 32], strides = [1, 1]} : vector<8x128xf32> to vector<8x32xf32>
    %475 = vector.extract_strided_slice %472 {offsets = [0, 64], sizes = [8, 32], strides = [1, 1]} : vector<8x128xf32> to vector<8x32xf32>
    %476 = vector.extract_strided_slice %467 {offsets = [0, 96], sizes = [8, 32], strides = [1, 1]} : vector<8x128xf32> to vector<8x32xf32>
    %477 = math.tanh %476 : vector<8x32xf32>
    %478 = arith.mulf %473, %461 : vector<8x32xf32>
    %479 = arith.mulf %474, %477 : vector<8x32xf32>
    %480 = arith.addf %478, %479 : vector<8x32xf32>
    %481 = math.tanh %480 : vector<8x32xf32>
    %482 = arith.mulf %475, %481 : vector<8x32xf32>
    %cst_125 = arith.constant dense<0.000000e+00> : vector<8x32xf32>
    %483 = tpu.matmul %446, %6, %cst_125 {dimension_numbers = #tpu.dot_dimension_numbers<[1], [0], [0], [1], [0, 0, 1, 1], [], []>} : vector<8x32xf32>, vector<32x32xf32>, vector<8x32xf32> -> vector<8x32xf32>
    %484 = vector.broadcast %7 : vector<1x32xf32> to vector<8x32xf32>
    %485 = arith.addf %483, %484 : vector<8x32xf32>
    %486 = arith.negf %485 : vector<8x32xf32>
    %487 = math.exp %486 : vector<8x32xf32>
    %cst_126 = arith.constant 1.000000e+00 : f32
    %488 = vector.broadcast %cst_126 : f32 to vector<8x32xf32>
    %489 = arith.addf %488, %487 : vector<8x32xf32>
    %490 = arith.divf %488, %489 : vector<8x32xf32>
    %491 = arith.subf %446, %490 : vector<8x32xf32>
    %cst_127 = arith.constant dense<0.000000e+00> : vector<8x128xf32>
    %492 = tpu.matmul %482, %3, %cst_127 {dimension_numbers = #tpu.dot_dimension_numbers<[1], [0], [0], [1], [0, 0, 1, 1], [], []>} : vector<8x32xf32>, vector<32x128xf32>, vector<8x128xf32> -> vector<8x128xf32>
    %cst_128 = arith.constant dense<0.000000e+00> : vector<8x128xf32>
    %493 = tpu.matmul %448, %4, %cst_128 {dimension_numbers = #tpu.dot_dimension_numbers<[1], [0], [0], [1], [0, 0, 1, 1], [], []>} : vector<8x32xf32>, vector<32x128xf32>, vector<8x128xf32> -> vector<8x128xf32>
    %494 = arith.addf %492, %493 : vector<8x128xf32>
    %495 = vector.broadcast %5 : vector<1x128xf32> to vector<8x128xf32>
    %496 = arith.addf %494, %495 : vector<8x128xf32>
    %497 = arith.negf %496 : vector<8x128xf32>
    %498 = math.exp %497 : vector<8x128xf32>
    %cst_129 = arith.constant 1.000000e+00 : f32
    %499 = vector.broadcast %cst_129 : f32 to vector<8x128xf32>
    %500 = arith.addf %499, %498 : vector<8x128xf32>
    %501 = arith.divf %499, %500 : vector<8x128xf32>
    %502 = vector.extract_strided_slice %501 {offsets = [0, 0], sizes = [8, 32], strides = [1, 1]} : vector<8x128xf32> to vector<8x32xf32>
    %503 = vector.extract_strided_slice %501 {offsets = [0, 32], sizes = [8, 32], strides = [1, 1]} : vector<8x128xf32> to vector<8x32xf32>
    %504 = vector.extract_strided_slice %501 {offsets = [0, 64], sizes = [8, 32], strides = [1, 1]} : vector<8x128xf32> to vector<8x32xf32>
    %505 = vector.extract_strided_slice %496 {offsets = [0, 96], sizes = [8, 32], strides = [1, 1]} : vector<8x128xf32> to vector<8x32xf32>
    %506 = math.tanh %505 : vector<8x32xf32>
    %507 = arith.mulf %502, %491 : vector<8x32xf32>
    %508 = arith.mulf %503, %506 : vector<8x32xf32>
    %509 = arith.addf %507, %508 : vector<8x32xf32>
    %510 = math.tanh %509 : vector<8x32xf32>
    %511 = arith.mulf %504, %510 : vector<8x32xf32>
    %512 = arith.index_cast %c7_i32_117 : i32 to index
    %c0_130 = arith.constant 0 : index
    %c0_131 = arith.constant 0 : index
    %513 = vector.load %arg12[%512, %c0_130, %c0_131] : memref<8x8x32xf32, #tpu.memory_space<vmem>>, vector<1x8x32xf32>
    %514 = vector.shape_cast %513 : vector<1x8x32xf32> to vector<8x32xf32>
    %515 = vector.shape_cast %511 : vector<8x32xf32> to vector<1x8x32xf32>
    tpu.vector_store %arg12[%512, %c0_130, %c0_131], %515 {strides = array<i32>} : memref<8x8x32xf32, #tpu.memory_space<vmem>>, vector<1x8x32xf32>,
    %c8_i32 = arith.constant 8 : i32
    return
  }
  func.func @transform_0(%arg0: i32) -> (i32, i32, i32) {
    %c0_i32 = arith.constant 0 : i32
    %c0_i32_0 = arith.constant 0 : i32
    %c0_i32_1 = arith.constant 0 : i32
    %c0_i32_2 = arith.constant 0 : i32
    return %c0_i32, %c0_i32_0, %c0_i32_1 : i32, i32, i32
  }
  func.func @transform_1(%arg0: i32) -> (i32, i32) {
    %c0_i32 = arith.constant 0 : i32
    %c0_i32_0 = arith.constant 0 : i32
    %c0_i32_1 = arith.constant 0 : i32
    return %c0_i32, %c0_i32_0 : i32, i32
  }
  func.func @transform_2(%arg0: i32) -> (i32, i32) {
    %c0_i32 = arith.constant 0 : i32
    %c0_i32_0 = arith.constant 0 : i32
    %c0_i32_1 = arith.constant 0 : i32
    return %c0_i32, %c0_i32_0 : i32, i32
  }
  func.func @transform_3(%arg0: i32) -> (i32, i32) {
    %c0_i32 = arith.constant 0 : i32
    %c0_i32_0 = arith.constant 0 : i32
    %c0_i32_1 = arith.constant 0 : i32
    return %c0_i32, %c0_i32_0 : i32, i32
  }
  func.func @transform_4(%arg0: i32) -> (i32, i32) {
    %c0_i32 = arith.constant 0 : i32
    %c0_i32_0 = arith.constant 0 : i32
    %c0_i32_1 = arith.constant 0 : i32
    return %c0_i32, %c0_i32_0 : i32, i32
  }
  func.func @transform_5(%arg0: i32) -> (i32, i32) {
    %c0_i32 = arith.constant 0 : i32
    %c0_i32_0 = arith.constant 0 : i32
    %c0_i32_1 = arith.constant 0 : i32
    return %c0_i32, %c0_i32_0 : i32, i32
  }
  func.func @transform_6(%arg0: i32) -> (i32, i32) {
    %c0_i32 = arith.constant 0 : i32
    %c0_i32_0 = arith.constant 0 : i32
    %c0_i32_1 = arith.constant 0 : i32
    return %c0_i32, %c0_i32_0 : i32, i32
  }
  func.func @transform_7(%arg0: i32) -> (i32, i32) {
    %c0_i32 = arith.constant 0 : i32
    %c0_i32_0 = arith.constant 0 : i32
    %c0_i32_1 = arith.constant 0 : i32
    return %c0_i32, %c0_i32_0 : i32, i32
  }
  func.func @transform_8(%arg0: i32) -> (i32, i32) {
    %c0_i32 = arith.constant 0 : i32
    %c0_i32_0 = arith.constant 0 : i32
    %c0_i32_1 = arith.constant 0 : i32
    return %c0_i32, %c0_i32_0 : i32, i32
  }
  func.func @transform_9(%arg0: i32) -> (i32, i32) {
    %c0_i32 = arith.constant 0 : i32
    %c0_i32_0 = arith.constant 0 : i32
    %c0_i32_1 = arith.constant 0 : i32
    return %c0_i32, %c0_i32_0 : i32, i32
  }
  func.func @transform_10(%arg0: i32) -> (i32, i32) {
    %c0_i32 = arith.constant 0 : i32
    %c0_i32_0 = arith.constant 0 : i32
    %c0_i32_1 = arith.constant 0 : i32
    return %c0_i32, %c0_i32_0 : i32, i32
  }
  func.func @transform_11(%arg0: i32) -> (i32, i32, i32) {
    %c0_i32 = arith.constant 0 : i32
    %c0_i32_0 = arith.constant 0 : i32
    %c0_i32_1 = arith.constant 0 : i32
    %c0_i32_2 = arith.constant 0 : i32
    return %c0_i32, %c0_i32_0, %c0_i32_1 : i32, i32, i32
  }
}

</mosaic_0001>

<bundles_post_ra>
// kernel: tlstm_decoder_forward.1
= control target key start
LH: loop header
LB: loop body
LE: loop exit
PB: predicated region body
PF: predicated region fallthrough
CT: control target
= control target key end

     0   :  { %v4732_v0 = vmov 0.0|0.0   ;;  %vm4733_vm0 = vmmov 0   ;;  %v4734_v8 = vmov 0.0   ;;  %vm69_vm1 = vcmask 261120   ;;  %s4735_s24 = smov 64   ;;  %s5420_s4 = inlined_call_operand.vmem [shape: f32[32,32], index: 4, kind: input, shape index: {}]   ;;  %s5421_s3 = inlined_call_operand.vmem [shape: f32[32,128], index: 3, kind: input, shape index: {}]   ;;  %s5422_s2 = inlined_call_operand.vmem [shape: f32[8,32], index: 2, kind: input, shape index: {}]   ;;  %s5423_s1 = inlined_call_operand.vmem [shape: f32[8,32], index: 1, kind: input, shape index: {}]   ;;  %s5424_s0 = inlined_call_operand.vmem [shape: f32[8,8,128], index: 0, kind: input, shape index: {}]   ;;  %s5425_s7 = inlined_call_operand.vmem [shape: f32[32,128], index: 7, kind: input, shape index: {}]   ;;  %s5426_s5 = inlined_call_operand.vmem [shape: f32[1,32], index: 5, kind: input, shape index: {}]   ;;  %s5427_s9 = inlined_call_operand.vmem [shape: f32[32,32], index: 9, kind: input, shape index: {}]   ;;  %s5428_s6 = inlined_call_operand.vmem [shape: f32[32,128], index: 6, kind: input, shape index: {}]   ;;  %s5429_s8 = inlined_call_operand.vmem [shape: f32[1,128], index: 8, kind: input, shape index: {}]   ;;  %s5430_s10 = inlined_call_operand.vmem [shape: f32[1,32], index: 10, kind: input, shape index: {}]   ;;  %s5431_s11 = inlined_call_operand.vmem [shape: f32[8,8,32], index: 11, kind: output, shape index: {}]  }
   0x1   :  { %4292 = vmatprep.subr.bf16.mxu0 %v4732_v0  ;;  %4298 = vmatprep.subr.bf16.mxu1 %v4732_v0  ;;  %v42_v1 = vld [vmem:[%s5420_s4] sm:$0xff]  ;;  %v43_v2 = vld [vmem:[%s5420_s4 + $0x8] sm:$0xff]  ;;  %v44_v6 = vld [vmem:[%s5420_s4 + $0x10] sm:$0xff] }
   0x2   :  { %v38_v3 = vld [vmem:[%s5421_s3] sm:$0xff]  ;;  %v4808_v4 = vpack.c.bf16 %v43_v2, %v42_v1  ;;  %v39_v5 = vld [vmem:[%s5421_s3 + $0x8] sm:$0xff]  ;;  %v45_v7 = vld [vmem:[%s5420_s4 + $0x18] sm:$0xff]  ;;  %3860 = vmatprep.mubr.msk.f32.mxu0 %vm4733_vm0, %v4734_v8  ;;  %3871 = vmatprep.mubr.msk.f32.mxu1 %vm4733_vm0, %v4734_v8 }
   0x3   :  { %v4823_v9 = vpack.c.bf16 %v39_v5, %v38_v3  ;;  %v40_v10 = vld [vmem:[%s5421_s3 + $0x10] sm:$0xff]  ;;  %v41_v11 = vld [vmem:[%s5421_s3 + $0x18] sm:$0xff]  ;;  %v4832_v12 = vpack.c.bf16 %v45_v7, %v44_v6  ;;  %v62_v14 = vld [vmem:[%s5422_s2] sm:$0xff] }
   0x4   :  { %4294 = vmatpush3.bf16.msra.mxu0 %v4808_v4  ;;  %v4836_v13 = vpack.c.bf16 %v41_v11, %v40_v10  ;;  %v61_v15 = vld [vmem:[%s5423_s1] sm:$0xff]  ;;  %v3568_v16 = vld [vmem:[%s5424_s0 + $0x38] sm:$0xff]  ;;  %v52_v23 = vld [vmem:[%s5425_s7 + $0x8] sm:$0xff] }
   0x5   :  { %4300 = vmatpush3.bf16.msra.mxu1 %v4823_v9  ;;  %4295 = vmatprep.subr.bf16.mxu0 %v4732_v0  ;;  %v51_v22 = vld [vmem:[%s5425_s7] sm:$0xff]  ;;  %v53_v24 = vld [vmem:[%s5425_s7 + $0x10] sm:$0xff]  ;;  %v54_v26 = vld [vmem:[%s5425_s7 + $0x18] sm:$0xff]  ;;  %s4736_s7 = smov 96  }
   0x6   :  { %4301 = vmatprep.subr.bf16.mxu1 %v4732_v0  ;;  %v4867_v25 = vpack.c.bf16 %v52_v23, %v51_v22  ;;  %v4873_v27 = vpack.c.bf16 %v54_v26, %v53_v24  ;;  %v4890_v35 = vld [vmem:[%s5426_s5] ss:$0 sm:$0xff]  ;;  %v57_v49 = vld [vmem:[%s5427_s9 + $0x8] sm:$0xff]  ;;  %v58_v51 = vld [vmem:[%s5427_s9 + $0x10] sm:$0xff] }
   0x7   :  { %v56_v48 = vld [vmem:[%s5427_s9] sm:$0xff]  ;;  %v59_v52 = vld [vmem:[%s5427_s9 + $0x18] sm:$0xff]  ;;  %v48_v55 = vld [vmem:[%s5428_s6 + $0x8] sm:$0xff] }
   0x8   :  { %4297 = vmatpush3.bf16.msra.mxu0 %v4832_v12  ;;  %v4907_v50 = vpack.c.bf16 %v57_v49, %v56_v48  ;;  %v4919_v53 = vpack.c.bf16 %v59_v52, %v58_v51  ;;  %v47_v54 = vld [vmem:[%s5428_s6] sm:$0xff]  ;;  %v49_v57 = vld [vmem:[%s5428_s6 + $0x10] sm:$0xff]  ;;  %v50_v58 = vld [vmem:[%s5428_s6 + $0x18] sm:$0xff] }
   0x9   :  { %4303 = vmatpush3.bf16.msra.mxu1 %v4836_v13  ;;  %4304 = vmatprep.subr.bf16.mxu0 %v4732_v0  ;;  %v4928_v56 = vpack.c.bf16 %v48_v55, %v47_v54  ;;  %v4941_v59 = vpack.c.bf16 %v50_v58, %v49_v57  ;;  %v4966_v5 = vld [vmem:[%s5429_s8] ss:$0 sm:$0xff] }
   0xa   :  { %4310 = vmatprep.subr.bf16.mxu1 %v4732_v0 }
   0xb   :  { %3861 = vmatmul.mubr.msk.f32.vlgmr.msra.gmra.mrb[0].mxu0 %vm69_vm1, %v62_v14 }
   0xc   :  { %3872 = vmatmul.mubr.msk.f32.vlgmr.msra.gmra.mrb[0].mxu1 %vm69_vm1, %v61_v15  ;;  %3882 = vmatprep.mubr.msk.f32.mxu0 %vm4733_vm0, %v4734_v8 }
   0xd   :  { %3893 = vmatprep.mubr.msk.f32.mxu1 %vm4733_vm0, %v4734_v8  ;;  %4312 = vmatpush3.bf16.msra.mxu1 %v4867_v25 }
   0xe   :  { %4313 = vmatprep.subr.bf16.mxu1 %v4732_v0  ;;  %4306 = vmatpush3.bf16.msra.mxu0 %v4907_v50 }
   0xf   :  { %4307 = vmatprep.subr.bf16.mxu0 %v4732_v0 }
  0x11   :  { %4315 = vmatpush3.bf16.msra.mxu1 %v4873_v27 }
  0x12   :  { %4322 = vmatprep.subr.bf16.mxu1 %v4732_v0  ;;  %4309 = vmatpush3.bf16.msra.mxu0 %v4919_v53 }
  0x13   :  { %4316 = vmatprep.subr.bf16.mxu0 %v4732_v0 }
  0x14   :  { %3894 = vmatmul.mubr.f32.vlgmr.msra.gmra.mrb[2].mxu1 %v4734_v8 }
  0x15   :  { %4324 = vmatpush3.bf16.msra.mxu1 %v4808_v4  ;;  %3915 = vmatprep.mubr.msk.f32.mxu1 %vm4733_vm0, %v4734_v8 }
  0x16   :  { %4325 = vmatprep.subr.bf16.mxu1 %v4732_v0  ;;  %3883 = vmatmul.mubr.f32.vlgmr.msra.gmra.mrb[2].mxu0 %v4734_v8 }
  0x17   :  { %4318 = vmatpush3.bf16.msra.mxu0 %v4928_v56  ;;  %3904 = vmatprep.mubr.msk.f32.mxu0 %vm4733_vm0, %v4734_v8 }
  0x18   :  { %4319 = vmatprep.subr.bf16.mxu0 %v4732_v0 }
  0x19   :  { %4327 = vmatpush3.bf16.msra.mxu1 %v4832_v12 }
  0x1a   :  { %4334 = vmatprep.subr.bf16.mxu1 %v4732_v0 }
  0x1b   :  { %4321 = vmatpush3.bf16.msra.mxu0 %v4941_v59 }
  0x1c   :  { %4328 = vmatprep.subr.bf16.mxu0 %v4732_v0 }
  0xde   :  { %v139_v17 = vpop.f32.mrb[0].mxu0 }
  0xdf   :  { %v221_v18 = vpop.f32.mrb[0].mxu1  ;;  %v3862_v19 = vpop.f32.mrb[1].mxu0  ;;  %v140_v36 = vadd.f32 %v4890_v35, %v139_v17 }
  0xe0   :  { %v225_v20 = vadd.f32 %v3568_v16, %v221_v18  ;;  %v3873_v21 = vpop.f32.mrb[1].mxu1 }
  0xe1   :  { %v3567_v37 = vmul.f32 -1.442695, %v140_v36 }
  0xe2   :  { %4537 = vtanh.f32 %v225_v20  ;;  %v3570_v29 = vmul.f32 -1.442695, %v225_v20 }
  0xe4   :  { %4539 = vpow2.f32 %v3570_v29 }
  0xe7   :  { %v402_v45 = vpop.f32.mrb[2].mxu1 }
  0xe8   :  { %v3895_v46 = vpop.f32.mrb[3].mxu1 }
  0xe9   :  { %v325_v2 = vpop.f32.mrb[2].mxu0 }
  0xea   :  { %v3884_v3 = vpop.f32.mrb[3].mxu0 }
  0xec   :  { %v4538_v28 = vpop.eup %4537 }
  0xed   :  { %235 = vrot.lane.b32.xlu0 %v4538_v28, %s4735_s24 }
  0xee   :  { %v4540_v30 = vpop.eup %4539 }
  0xef   :  { %v229_v31 = vadd.f32 1.0, %v4540_v30 }
  0xf1   :  { %4541 = vrcp.f32 %v229_v31 }
  0xf2   :  { %4543 = vpow2.f32 %v3567_v37 }
  0xfb   :  { %v4542_v32 = vpop.eup %4541 }
  0xfc   :  { %v4544_v38 = vpop.eup %4543 }
  0xfd   :  { %v146_v39 = vadd.f32 1.0, %v4544_v38 }
  0xff   :  { %4545 = vrcp.f32 %v146_v39 }
 0x109   :  { %v4546_v40 = vpop.eup %4545 }
 0x10a   :  { %v149_v41 = vsub.f32 %v62_v14, %v4546_v40  ;;  %v3578_v14 = vld [vmem:[%s5424_s0 + $0x30] sm:$0xff] }
 0x10c   :  { %v233_v42 = vmul.f32 %v4542_v32, %v149_v41 }
 0x15f   :  { %v236_v33 = vpop.permute.xlu0 %235 }
 0x160   :  { %v238_v34 = vmul.f32 %v4542_v32, %v236_v33 }
 0x162   :  { %240 = vrot.lane.b32.xlu0 %v238_v34, %s4736_s7  ;;  %v4979_v34 = vld [vmem:[%s5430_s10] ss:$0 sm:$0xff] }
 0x163   :  { %v326_v36 = vadd.f32 %v4979_v34, %v325_v2 }
 0x165   :  { %v3572_v37 = vmul.f32 -1.442695, %v326_v36 }
 0x1d4   :  { %v241_v43 = vpop.permute.xlu0 %240 }
 0x1d5   :  { %v4893_v44 = vadd.f32 %v241_v43, %v233_v42 }
 0x1d7   :  { %4547 = vtanh.f32 %v4893_v44  ;;  %3916 = vmatmul.mubr.msk.f32.vlgmr.msra.gmra.mrb[4].mxu1 %vm69_vm1, %v4893_v44 }
 0x1d8   :  { %3937 = vmatprep.mubr.msk.f32.mxu1 %vm4733_vm0, %v4734_v8  ;;  %4336 = vmatpush3.bf16.msra.mxu1 %v4907_v50 }
 0x1d9   :  { %4337 = vmatprep.subr.bf16.mxu1 %v4732_v0 }
 0x1dc   :  { %4339 = vmatpush3.bf16.msra.mxu1 %v4919_v53 }
 0x1dd   :  { %4346 = vmatprep.subr.bf16.mxu1 %v4732_v0 }
 0x1e1   :  { %v4548_v47 = vpop.eup %4547 }
 0x1e2   :  { %246 = vrot.lane.b32.xlu1 %v4548_v47, %s4735_s24 }
 0x254   :  { %v247_v60 = vpop.permute.xlu1 %246 }
 0x255   :  { %v249_v61 = vmul.f32 %v4542_v32, %v247_v60 }
 0x257   :  { %407 = vrot.lane.b32.xlu1 %v249_v61, %s4735_s24 }
 0x2aa   :  { %v586_v62 = vpop.f32.mrb[4].mxu1 }
 0x2ab   :  { %v3917_v63 = vpop.f32.mrb[5].mxu1  ;;  %v587_v38 = vadd.f32 %v4890_v35, %v586_v62 }
 0x2ad   :  { %v3577_v39 = vmul.f32 -1.442695, %v587_v38 }
 0x2c9   :  { %v408_v1 = vpop.permute.xlu1 %407 }
 0x2ca   :  { %3905 = vmatmul.mubr.msk.f32.vlgmr.msra.gmra.mrb[4].mxu0 %vm69_vm1, %v408_v1 }
 0x2cb   :  { %4330 = vmatpush3.bf16.msra.mxu0 %v4823_v9  ;;  %3926 = vmatprep.mubr.msk.f32.mxu0 %vm4733_vm0, %v4734_v8 }
 0x2cc   :  { %4331 = vmatprep.subr.bf16.mxu0 %v4732_v0 }
 0x2cf   :  { %4333 = vmatpush3.bf16.msra.mxu0 %v4836_v13 }
 0x2d0   :  { %4340 = vmatprep.subr.bf16.mxu0 %v4732_v0 }
 0x2d2   :  { %3927 = vmatmul.mubr.msk.f32.vlgmr.msra.gmra.mrb[6].mxu0 %vm69_vm1, %v408_v1 }
 0x2d3   :  { %4342 = vmatpush3.bf16.msra.mxu0 %v4867_v25  ;;  %3948 = vmatprep.mubr.msk.f32.mxu0 %vm4733_vm0, %v4734_v8 }
 0x2d4   :  { %4343 = vmatprep.subr.bf16.mxu0 %v4732_v0 }
 0x2d7   :  { %4345 = vmatpush3.bf16.msra.mxu0 %v4873_v27 }
 0x2d8   :  { %4352 = vmatprep.subr.bf16.mxu0 %v4732_v0 }
 0x39d   :  { %v477_v6 = vpop.f32.mrb[4].mxu0 }
 0x39e   :  { %v478_v7 = vadd.f32 %v477_v6, %v402_v45  ;;  %v3906_v10 = vpop.f32.mrb[5].mxu0 }
 0x3a0   :  { %v487_v11 = vadd.f32 %v4966_v5, %v478_v7 }
 0x3a2   :  { %4549 = vtanh.f32 %v487_v11  ;;  %v3575_v20 = vmul.f32 -1.442695, %v487_v11 }
 0x3a5   :  { %v665_v15 = vpop.f32.mrb[6].mxu0 }
 0x3a6   :  { %v669_v16 = vadd.f32 %v3578_v14, %v665_v15  ;;  %v3928_v17 = vpop.f32.mrb[7].mxu0 }
 0x3a8   :  { %4551 = vtanh.f32 %v669_v16  ;;  %v3580_v21 = vmul.f32 -1.442695, %v669_v16 }
 0x3a9   :  { %4553 = vpow2.f32 %v3575_v20 }
 0x3aa   :  { %4555 = vpow2.f32 %v3580_v21 }
 0x3ac   :  { %v4550_v18 = vpop.eup %4549 }
 0x3ad   :  { %497 = vrot.lane.b32.xlu1 %v4550_v18, %s4735_s24 }
 0x3b2   :  { %v4552_v19 = vpop.eup %4551 }
 0x3b3   :  { %679 = vrot.lane.b32.xlu0 %v4552_v19, %s4735_s24  ;;  %v4554_v22 = vpop.eup %4553  ;;  %v3589_v19 = vld [vmem:[%s5424_s0 + $0x28] sm:$0xff] }
 0x3b4   :  { %v491_v23 = vadd.f32 1.0, %v4554_v22  ;;  %v4556_v24 = vpop.eup %4555 }
 0x3b5   :  { %v673_v26 = vadd.f32 1.0, %v4556_v24 }
 0x3b6   :  { %4557 = vrcp.f32 %v491_v23 }
 0x3b7   :  { %4559 = vrcp.f32 %v673_v26 }
 0x3b8   :  { %4561 = vpow2.f32 %v3572_v37 }
 0x3b9   :  { %4563 = vpow2.f32 %v3577_v39 }
 0x3c0   :  { %v4558_v28 = vpop.eup %4557 }
 0x3c1   :  { %v4560_v31 = vpop.eup %4559 }
 0x3c2   :  { %v4562_v40 = vpop.eup %4561 }
 0x3c3   :  { %v332_v41 = vadd.f32 1.0, %v4562_v40  ;;  %v4564_v42 = vpop.eup %4563 }
 0x3c4   :  { %v593_v43 = vadd.f32 1.0, %v4564_v42 }
 0x3c5   :  { %4565 = vrcp.f32 %v332_v41 }
 0x3c6   :  { %4567 = vrcp.f32 %v593_v43 }
 0x3cf   :  { %v4566_v45 = vpop.eup %4565 }
 0x3d0   :  { %v335_v46 = vsub.f32 0.0, %v4566_v45  ;;  %v4568_v48 = vpop.eup %4567 }
 0x3d1   :  { %v596_v52 = vsub.f32 %v4893_v44, %v4568_v48 }
 0x3d2   :  { %v495_v47 = vmul.f32 %v4558_v28, %v335_v46 }
 0x3d3   :  { %v677_v54 = vmul.f32 %v4560_v31, %v596_v52 }
 0x41f   :  { %v498_v29 = vpop.permute.xlu1 %497 }
 0x420   :  { %v500_v30 = vmul.f32 %v4558_v28, %v498_v29 }
 0x422   :  { %502 = vrot.lane.b32.xlu1 %v500_v30, %s4736_s7 }
 0x425   :  { %v680_v32 = vpop.permute.xlu0 %679 }
 0x426   :  { %v682_v33 = vmul.f32 %v4560_v31, %v680_v32 }
 0x428   :  { %684 = vrot.lane.b32.xlu0 %v682_v33, %s4736_s7 }
 0x494   :  { %v503_v49 = vpop.permute.xlu1 %502 }
 0x495   :  { %v4983_v51 = vadd.f32 %v503_v49, %v495_v47 }
 0x497   :  { %4569 = vtanh.f32 %v4983_v51  ;;  %3938 = vmatmul.mubr.msk.f32.vlgmr.msra.gmra.mrb[6].mxu1 %vm69_vm1, %v4983_v51 }
 0x498   :  { %4348 = vmatpush3.bf16.msra.mxu1 %v4928_v56  ;;  %3959 = vmatprep.mubr.msk.f32.mxu1 %vm4733_vm0, %v4734_v8 }
 0x499   :  { %4349 = vmatprep.subr.bf16.mxu1 %v4732_v0 }
 0x49a   :  { %v685_v55 = vpop.permute.xlu0 %684 }
 0x49b   :  { %v4993_v57 = vadd.f32 %v685_v55, %v677_v54 }
 0x49c   :  { %4351 = vmatpush3.bf16.msra.mxu1 %v4941_v59 }
 0x49d   :  { %4571 = vtanh.f32 %v4993_v57  ;;  %4358 = vmatprep.subr.bf16.mxu1 %v4732_v0 }
 0x4a1   :  { %v4570_v58 = vpop.eup %4569 }
 0x4a2   :  { %508 = vrot.lane.b32.xlu1 %v4570_v58, %s4735_s24 }
 0x4a7   :  { %v4572_v44 = vpop.eup %4571 }
 0x4a8   :  { %690 = vrot.lane.b32.xlu0 %v4572_v44, %s4735_s24 }
 0x514   :  { %v509_v60 = vpop.permute.xlu1 %508 }
 0x515   :  { %v511_v61 = vmul.f32 %v4558_v28, %v509_v60 }
 0x517   :  { %513 = vrot.lane.b32.xlu1 %v511_v61, %s4735_s24 }
 0x51a   :  { %v691_v62 = vpop.permute.xlu0 %690 }
 0x51b   :  { %v693_v63 = vmul.f32 %v4560_v31, %v691_v62 }
 0x51d   :  { %847 = vrot.lane.b32.xlu0 %v693_v63, %s4735_s24 }
 0x56a   :  { %v5002_v1 = vpop.f32.mrb[6].mxu1 }
 0x56b   :  { %v3939_v2 = vpop.f32.mrb[7].mxu1  ;;  %v764_v41 = vadd.f32 %v4979_v34, %v5002_v1 }
 0x56d   :  { %v3582_v42 = vmul.f32 -1.442695, %v764_v41 }
 0x589   :  { %v514_v3 = vpop.permute.xlu1 %513 }
 0x58a   :  { %516 = vst.msk [vmem:[%s5431_s11] sm:$0xff] %vm69_vm1, %v514_v3  ;;  %3949 = vmatmul.mubr.msk.f32.vlgmr.msra.gmra.mrb[8].mxu0 %vm69_vm1, %v514_v3 }
 0x58b   :  { %4354 = vmatpush3.bf16.msra.mxu0 %v4808_v4  ;;  %3970 = vmatprep.mubr.msk.f32.mxu0 %vm4733_vm0, %v4734_v8 }
 0x58c   :  { %4355 = vmatprep.subr.bf16.mxu0 %v4732_v0 }
 0x58f   :  { %4357 = vmatpush3.bf16.msra.mxu0 %v4832_v12  ;;  %v848_v6 = vpop.permute.xlu0 %847 }
 0x590   :  { %3960 = vmatmul.mubr.msk.f32.vlgmr.msra.gmra.mrb[8].mxu1 %vm69_vm1, %v848_v6  ;;  %4364 = vmatprep.subr.bf16.mxu0 %v4732_v0 }
 0x591   :  { %4360 = vmatpush3.bf16.msra.mxu1 %v4823_v9  ;;  %3981 = vmatprep.mubr.msk.f32.mxu1 %vm4733_vm0, %v4734_v8 }
 0x592   :  { %3971 = vmatmul.mubr.msk.f32.vlgmr.msra.gmra.mrb[10].mxu0 %vm69_vm1, %v4993_v57  ;;  %4361 = vmatprep.subr.bf16.mxu1 %v4732_v0 }
 0x593   :  { %4366 = vmatpush3.bf16.msra.mxu0 %v4907_v50  ;;  %3992 = vmatprep.mubr.msk.f32.mxu0 %vm4733_vm0, %v4734_v8 }
 0x594   :  { %4367 = vmatprep.subr.bf16.mxu0 %v4732_v0 }
 0x595   :  { %4363 = vmatpush3.bf16.msra.mxu1 %v4836_v13 }
 0x596   :  { %4370 = vmatprep.subr.bf16.mxu1 %v4732_v0 }
 0x597   :  { %4369 = vmatpush3.bf16.msra.mxu0 %v4919_v53 }
 0x598   :  { %3982 = vmatmul.mubr.msk.f32.vlgmr.msra.gmra.mrb[10].mxu1 %vm69_vm1, %v848_v6  ;;  %4376 = vmatprep.subr.bf16.mxu0 %v4732_v0 }
 0x599   :  { %4372 = vmatpush3.bf16.msra.mxu1 %v4867_v25  ;;  %4003 = vmatprep.mubr.msk.f32.mxu1 %vm4733_vm0, %v4734_v8 }
 0x59a   :  { %4373 = vmatprep.subr.bf16.mxu1 %v4732_v0 }
 0x59d   :  { %4375 = vmatpush3.bf16.msra.mxu1 %v4873_v27 }
 0x59e   :  { %4382 = vmatprep.subr.bf16.mxu1 %v4732_v0 }
 0x65d   :  { %v842_v7 = vpop.f32.mrb[8].mxu0 }
 0x65e   :  { %v3950_v10 = vpop.f32.mrb[9].mxu0 }
 0x663   :  { %v917_v11 = vpop.f32.mrb[8].mxu1 }
 0x664   :  { %v918_v14 = vadd.f32 %v917_v11, %v842_v7  ;;  %v3961_v15 = vpop.f32.mrb[9].mxu1 }
 0x665   :  { %v1021_v16 = vpop.f32.mrb[10].mxu0 }
 0x666   :  { %v921_v17 = vadd.f32 %v4966_v5, %v918_v14  ;;  %v3972_v18 = vpop.f32.mrb[11].mxu0  ;;  %v1022_v43 = vadd.f32 %v4890_v35, %v1021_v16 }
 0x668   :  { %4573 = vtanh.f32 %v921_v17  ;;  %v3585_v26 = vmul.f32 -1.442695, %v921_v17  ;;  %v3588_v45 = vmul.f32 -1.442695, %v1022_v43 }
 0x66b   :  { %v1100_v20 = vpop.f32.mrb[10].mxu1 }
 0x66c   :  { %v1104_v21 = vadd.f32 %v3589_v19, %v1100_v20  ;;  %v3983_v22 = vpop.f32.mrb[11].mxu1 }
 0x66e   :  { %4575 = vtanh.f32 %v1104_v21  ;;  %v3591_v28 = vmul.f32 -1.442695, %v1104_v21 }
 0x66f   :  { %4577 = vpow2.f32 %v3585_v26 }
 0x670   :  { %4579 = vpow2.f32 %v3591_v28 }
 0x672   :  { %v4574_v23 = vpop.eup %4573 }
 0x673   :  { %931 = vrot.lane.b32.xlu1 %v4574_v23, %s4735_s24 }
 0x678   :  { %v4576_v24 = vpop.eup %4575 }
 0x679   :  { %1114 = vrot.lane.b32.xlu0 %v4576_v24, %s4735_s24  ;;  %v4578_v29 = vpop.eup %4577  ;;  %v3600_v24 = vld [vmem:[%s5424_s0 + $0x20] sm:$0xff] }
 0x67a   :  { %v925_v30 = vadd.f32 1.0, %v4578_v29  ;;  %v4580_v31 = vpop.eup %4579 }
 0x67b   :  { %v1108_v32 = vadd.f32 1.0, %v4580_v31 }
 0x67c   :  { %4581 = vrcp.f32 %v925_v30 }
 0x67d   :  { %4583 = vrcp.f32 %v1108_v32 }
 0x67e   :  { %4585 = vpow2.f32 %v3582_v42 }
 0x67f   :  { %4587 = vpow2.f32 %v3588_v45 }
 0x686   :  { %v4582_v33 = vpop.eup %4581 }
 0x687   :  { %v4584_v38 = vpop.eup %4583 }
 0x688   :  { %v4586_v46 = vpop.eup %4585 }
 0x689   :  { %v770_v47 = vadd.f32 1.0, %v4586_v46  ;;  %v4588_v48 = vpop.eup %4587 }
 0x68a   :  { %v1028_v49 = vadd.f32 1.0, %v4588_v48 }
 0x68b   :  { %4589 = vrcp.f32 %v770_v47 }
 0x68c   :  { %4591 = vrcp.f32 %v1028_v49 }
 0x695   :  { %v4590_v52 = vpop.eup %4589 }
 0x696   :  { %v773_v54 = vsub.f32 %v4983_v51, %v4590_v52  ;;  %v4592_v58 = vpop.eup %4591 }
 0x697   :  { %v1031_v61 = vsub.f32 %v4993_v57, %v4592_v58 }
 0x698   :  { %v929_v55 = vmul.f32 %v4582_v33, %v773_v54 }
 0x699   :  { %v1112_v62 = vmul.f32 %v4584_v38, %v1031_v61 }
 0x6e5   :  { %v932_v36 = vpop.permute.xlu1 %931 }
 0x6e6   :  { %v934_v37 = vmul.f32 %v4582_v33, %v932_v36 }
 0x6e8   :  { %936 = vrot.lane.b32.xlu1 %v934_v37, %s4736_s7 }
 0x6eb   :  { %v1115_v39 = vpop.permute.xlu0 %1114 }
 0x6ec   :  { %v1117_v40 = vmul.f32 %v4584_v38, %v1115_v39 }
 0x6ee   :  { %1119 = vrot.lane.b32.xlu0 %v1117_v40, %s4736_s7 }
 0x75a   :  { %v937_v44 = vpop.permute.xlu1 %936 }
 0x75b   :  { %v5049_v60 = vadd.f32 %v937_v44, %v929_v55 }
 0x75d   :  { %4593 = vtanh.f32 %v5049_v60  ;;  %3993 = vmatmul.mubr.msk.f32.vlgmr.msra.gmra.mrb[12].mxu0 %vm69_vm1, %v5049_v60 }
 0x75e   :  { %4378 = vmatpush3.bf16.msra.mxu0 %v4928_v56  ;;  %4014 = vmatprep.mubr.msk.f32.mxu0 %vm4733_vm0, %v4734_v8 }
 0x75f   :  { %4379 = vmatprep.subr.bf16.mxu0 %v4732_v0 }
 0x760   :  { %v1120_v51 = vpop.permute.xlu0 %1119 }
 0x761   :  { %v5059_v63 = vadd.f32 %v1120_v51, %v1112_v62 }
 0x762   :  { %4381 = vmatpush3.bf16.msra.mxu0 %v4941_v59 }
 0x763   :  { %4595 = vtanh.f32 %v5059_v63  ;;  %4388 = vmatprep.subr.bf16.mxu0 %v4732_v0 }
 0x767   :  { %v4594_v1 = vpop.eup %4593 }
 0x768   :  { %942 = vrot.lane.b32.xlu1 %v4594_v1, %s4735_s24 }
 0x76d   :  { %v4596_v57 = vpop.eup %4595 }
 0x76e   :  { %1125 = vrot.lane.b32.xlu0 %v4596_v57, %s4735_s24 }
 0x7da   :  { %v943_v2 = vpop.permute.xlu1 %942 }
 0x7db   :  { %v945_v3 = vmul.f32 %v4582_v33, %v943_v2 }
 0x7dd   :  { %947 = vrot.lane.b32.xlu1 %v945_v3, %s4735_s24 }
 0x7e0   :  { %v1126_v6 = vpop.permute.xlu0 %1125 }
 0x7e1   :  { %v1128_v7 = vmul.f32 %v4584_v38, %v1126_v6 }
 0x7e3   :  { %1282 = vrot.lane.b32.xlu0 %v1128_v7, %s4735_s24 }
 0x830   :  { %v5068_v10 = vpop.f32.mrb[12].mxu0 }
 0x831   :  { %v3994_v11 = vpop.f32.mrb[13].mxu0  ;;  %v1199_v47 = vadd.f32 %v4979_v34, %v5068_v10 }
 0x833   :  { %v3593_v48 = vmul.f32 -1.442695, %v1199_v47 }
 0x84f   :  { %v948_v14 = vpop.permute.xlu1 %947 }
 0x850   :  { %3586 = vst.msk [vmem:[%s5431_s11 + $0x8] sm:$0xff] %vm69_vm1, %v948_v14  ;;  %4004 = vmatmul.mubr.msk.f32.vlgmr.msra.gmra.mrb[12].mxu1 %vm69_vm1, %v948_v14 }
 0x851   :  { %4384 = vmatpush3.bf16.msra.mxu1 %v4808_v4  ;;  %4025 = vmatprep.mubr.msk.f32.mxu1 %vm4733_vm0, %v4734_v8 }
 0x852   :  { %4385 = vmatprep.subr.bf16.mxu1 %v4732_v0 }
 0x855   :  { %4387 = vmatpush3.bf16.msra.mxu1 %v4832_v12  ;;  %v1283_v15 = vpop.permute.xlu0 %1282 }
 0x856   :  { %4015 = vmatmul.mubr.msk.f32.vlgmr.msra.gmra.mrb[14].mxu0 %vm69_vm1, %v1283_v15  ;;  %4394 = vmatprep.subr.bf16.mxu1 %v4732_v0 }
 0x857   :  { %4390 = vmatpush3.bf16.msra.mxu0 %v4823_v9  ;;  %4036 = vmatprep.mubr.msk.f32.mxu0 %vm4733_vm0, %v4734_v8 }
 0x858   :  { %4026 = vmatmul.mubr.msk.f32.vlgmr.msra.gmra.mrb[14].mxu1 %vm69_vm1, %v5059_v63  ;;  %4391 = vmatprep.subr.bf16.mxu0 %v4732_v0 }
 0x859   :  { %4396 = vmatpush3.bf16.msra.mxu1 %v4907_v50  ;;  %4047 = vmatprep.mubr.msk.f32.mxu1 %vm4733_vm0, %v4734_v8 }
 0x85a   :  { %4397 = vmatprep.subr.bf16.mxu1 %v4732_v0 }
 0x85b   :  { %4393 = vmatpush3.bf16.msra.mxu0 %v4836_v13 }
 0x85c   :  { %4400 = vmatprep.subr.bf16.mxu0 %v4732_v0 }
 0x85d   :  { %4399 = vmatpush3.bf16.msra.mxu1 %v4919_v53 }
 0x85e   :  { %4037 = vmatmul.mubr.msk.f32.vlgmr.msra.gmra.mrb[16].mxu0 %vm69_vm1, %v1283_v15  ;;  %4406 = vmatprep.subr.bf16.mxu1 %v4732_v0 }
 0x85f   :  { %4402 = vmatpush3.bf16.msra.mxu0 %v4867_v25  ;;  %4058 = vmatprep.mubr.msk.f32.mxu0 %vm4733_vm0, %v4734_v8 }
 0x860   :  { %4403 = vmatprep.subr.bf16.mxu0 %v4732_v0 }
 0x863   :  { %4405 = vmatpush3.bf16.msra.mxu0 %v4873_v27 }
 0x864   :  { %4412 = vmatprep.subr.bf16.mxu0 %v4732_v0 }
 0x923   :  { %v1277_v16 = vpop.f32.mrb[12].mxu1 }
 0x924   :  { %v4005_v17 = vpop.f32.mrb[13].mxu1 }
 0x929   :  { %v1352_v18 = vpop.f32.mrb[14].mxu0 }
 0x92a   :  { %v1353_v19 = vadd.f32 %v1352_v18, %v1277_v16  ;;  %v4016_v20 = vpop.f32.mrb[15].mxu0 }
 0x92b   :  { %v1456_v21 = vpop.f32.mrb[14].mxu1 }
 0x92c   :  { %v1356_v22 = vadd.f32 %v4966_v5, %v1353_v19  ;;  %v4027_v23 = vpop.f32.mrb[15].mxu1  ;;  %v1457_v49 = vadd.f32 %v4890_v35, %v1456_v21 }
 0x92e   :  { %4597 = vtanh.f32 %v1356_v22  ;;  %v3596_v32 = vmul.f32 -1.442695, %v1356_v22  ;;  %v3599_v52 = vmul.f32 -1.442695, %v1457_v49 }
 0x931   :  { %v1535_v26 = vpop.f32.mrb[16].mxu0 }
 0x932   :  { %v1539_v28 = vadd.f32 %v3600_v24, %v1535_v26  ;;  %v4038_v29 = vpop.f32.mrb[17].mxu0 }
 0x934   :  { %4599 = vtanh.f32 %v1539_v28  ;;  %v3602_v33 = vmul.f32 -1.442695, %v1539_v28 }
 0x935   :  { %4601 = vpow2.f32 %v3596_v32 }
 0x936   :  { %4603 = vpow2.f32 %v3602_v33 }
 0x938   :  { %v4598_v30 = vpop.eup %4597 }
 0x939   :  { %1366 = vrot.lane.b32.xlu1 %v4598_v30, %s4735_s24 }
 0x93e   :  { %v4600_v31 = vpop.eup %4599 }
 0x93f   :  { %1549 = vrot.lane.b32.xlu0 %v4600_v31, %s4735_s24  ;;  %v4602_v36 = vpop.eup %4601  ;;  %v3611_v31 = vld [vmem:[%s5424_s0 + $0x18] sm:$0xff] }
 0x940   :  { %v1360_v37 = vadd.f32 1.0, %v4602_v36  ;;  %v4604_v38 = vpop.eup %4603 }
 0x941   :  { %v1543_v39 = vadd.f32 1.0, %v4604_v38 }
 0x942   :  { %4605 = vrcp.f32 %v1360_v37 }
 0x943   :  { %4607 = vrcp.f32 %v1543_v39 }
 0x944   :  { %4609 = vpow2.f32 %v3593_v48 }
 0x945   :  { %4611 = vpow2.f32 %v3599_v52 }
 0x94c   :  { %v4606_v40 = vpop.eup %4605 }
 0x94d   :  { %v4608_v43 = vpop.eup %4607 }
 0x94e   :  { %v4610_v54 = vpop.eup %4609 }
 0x94f   :  { %v1205_v55 = vadd.f32 1.0, %v4610_v54  ;;  %v4612_v58 = vpop.eup %4611 }
 0x950   :  { %v1463_v44 = vadd.f32 1.0, %v4612_v58 }
 0x951   :  { %4613 = vrcp.f32 %v1205_v55 }
 0x952   :  { %4615 = vrcp.f32 %v1463_v44 }
 0x95b   :  { %v4614_v61 = vpop.eup %4613 }
 0x95c   :  { %v1208_v62 = vsub.f32 %v5049_v60, %v4614_v61  ;;  %v4616_v1 = vpop.eup %4615 }
 0x95d   :  { %v1466_v3 = vsub.f32 %v5059_v63, %v4616_v1 }
 0x95e   :  { %v1364_v51 = vmul.f32 %v4606_v40, %v1208_v62 }
 0x95f   :  { %v1547_v6 = vmul.f32 %v4608_v43, %v1466_v3 }
 0x9ab   :  { %v1367_v41 = vpop.permute.xlu1 %1366 }
 0x9ac   :  { %v1369_v42 = vmul.f32 %v4606_v40, %v1367_v41 }
 0x9ae   :  { %1371 = vrot.lane.b32.xlu1 %v1369_v42, %s4736_s7 }
 0x9b1   :  { %v1550_v45 = vpop.permute.xlu0 %1549 }
 0x9b2   :  { %v1552_v46 = vmul.f32 %v4608_v43, %v1550_v45 }
 0x9b4   :  { %1554 = vrot.lane.b32.xlu0 %v1552_v46, %s4736_s7 }
 0xa20   :  { %v1372_v57 = vpop.permute.xlu1 %1371 }
 0xa21   :  { %v5115_v2 = vadd.f32 %v1372_v57, %v1364_v51 }
 0xa23   :  { %4617 = vtanh.f32 %v5115_v2  ;;  %4048 = vmatmul.mubr.msk.f32.vlgmr.msra.gmra.mrb[16].mxu1 %vm69_vm1, %v5115_v2 }
 0xa24   :  { %4408 = vmatpush3.bf16.msra.mxu1 %v4928_v56  ;;  %4069 = vmatprep.mubr.msk.f32.mxu1 %vm4733_vm0, %v4734_v8 }
 0xa25   :  { %4409 = vmatprep.subr.bf16.mxu1 %v4732_v0 }
 0xa26   :  { %v1555_v60 = vpop.permute.xlu0 %1554 }
 0xa27   :  { %v5125_v7 = vadd.f32 %v1555_v60, %v1547_v6 }
 0xa28   :  { %4411 = vmatpush3.bf16.msra.mxu1 %v4941_v59 }
 0xa29   :  { %4619 = vtanh.f32 %v5125_v7  ;;  %4418 = vmatprep.subr.bf16.mxu1 %v4732_v0 }
 0xa2d   :  { %v4618_v10 = vpop.eup %4617 }
 0xa2e   :  { %1377 = vrot.lane.b32.xlu1 %v4618_v10, %s4735_s24 }
 0xa33   :  { %v4620_v63 = vpop.eup %4619 }
 0xa34   :  { %1560 = vrot.lane.b32.xlu0 %v4620_v63, %s4735_s24 }
 0xaa0   :  { %v1378_v11 = vpop.permute.xlu1 %1377 }
 0xaa1   :  { %v1380_v14 = vmul.f32 %v4606_v40, %v1378_v11 }
 0xaa3   :  { %1382 = vrot.lane.b32.xlu1 %v1380_v14, %s4735_s24 }
 0xaa6   :  { %v1561_v15 = vpop.permute.xlu0 %1560 }
 0xaa7   :  { %v1563_v16 = vmul.f32 %v4608_v43, %v1561_v15 }
 0xaa9   :  { %1717 = vrot.lane.b32.xlu0 %v1563_v16, %s4735_s24 }
 0xaf6   :  { %v5134_v17 = vpop.f32.mrb[16].mxu1 }
 0xaf7   :  { %v4049_v18 = vpop.f32.mrb[17].mxu1  ;;  %v1634_v55 = vadd.f32 %v4979_v34, %v5134_v17 }
 0xaf9   :  { %v3604_v58 = vmul.f32 -1.442695, %v1634_v55 }
 0xb15   :  { %v1383_v19 = vpop.permute.xlu1 %1382 }
 0xb16   :  { %3597 = vst.msk [vmem:[%s5431_s11 + $0x10] sm:$0xff] %vm69_vm1, %v1383_v19  ;;  %4059 = vmatmul.mubr.msk.f32.vlgmr.msra.gmra.mrb[18].mxu0 %vm69_vm1, %v1383_v19 }
 0xb17   :  { %4414 = vmatpush3.bf16.msra.mxu0 %v4808_v4  ;;  %4080 = vmatprep.mubr.msk.f32.mxu0 %vm4733_vm0, %v4734_v8 }
 0xb18   :  { %4415 = vmatprep.subr.bf16.mxu0 %v4732_v0 }
 0xb1b   :  { %4417 = vmatpush3.bf16.msra.mxu0 %v4832_v12  ;;  %v1718_v20 = vpop.permute.xlu0 %1717 }
 0xb1c   :  { %4070 = vmatmul.mubr.msk.f32.vlgmr.msra.gmra.mrb[18].mxu1 %vm69_vm1, %v1718_v20  ;;  %4424 = vmatprep.subr.bf16.mxu0 %v4732_v0 }
 0xb1d   :  { %4420 = vmatpush3.bf16.msra.mxu1 %v4823_v9  ;;  %4091 = vmatprep.mubr.msk.f32.mxu1 %vm4733_vm0, %v4734_v8 }
 0xb1e   :  { %4081 = vmatmul.mubr.msk.f32.vlgmr.msra.gmra.mrb[20].mxu0 %vm69_vm1, %v5125_v7  ;;  %4421 = vmatprep.subr.bf16.mxu1 %v4732_v0 }
 0xb1f   :  { %4426 = vmatpush3.bf16.msra.mxu0 %v4907_v50  ;;  %4102 = vmatprep.mubr.msk.f32.mxu0 %vm4733_vm0, %v4734_v8 }
 0xb20   :  { %4427 = vmatprep.subr.bf16.mxu0 %v4732_v0 }
 0xb21   :  { %4423 = vmatpush3.bf16.msra.mxu1 %v4836_v13 }
 0xb22   :  { %4430 = vmatprep.subr.bf16.mxu1 %v4732_v0 }
 0xb23   :  { %4429 = vmatpush3.bf16.msra.mxu0 %v4919_v53 }
 0xb24   :  { %4092 = vmatmul.mubr.msk.f32.vlgmr.msra.gmra.mrb[20].mxu1 %vm69_vm1, %v1718_v20  ;;  %4436 = vmatprep.subr.bf16.mxu0 %v4732_v0 }
 0xb25   :  { %4432 = vmatpush3.bf16.msra.mxu1 %v4867_v25  ;;  %4113 = vmatprep.mubr.msk.f32.mxu1 %vm4733_vm0, %v4734_v8 }
 0xb26   :  { %4433 = vmatprep.subr.bf16.mxu1 %v4732_v0 }
 0xb29   :  { %4435 = vmatpush3.bf16.msra.mxu1 %v4873_v27 }
 0xb2a   :  { %4442 = vmatprep.subr.bf16.mxu1 %v4732_v0 }
 0xbe9   :  { %v1712_v21 = vpop.f32.mrb[18].mxu0 }
 0xbea   :  { %v4060_v22 = vpop.f32.mrb[19].mxu0 }
 0xbef   :  { %v1787_v23 = vpop.f32.mrb[18].mxu1 }
 0xbf0   :  { %v1788_v24 = vadd.f32 %v1787_v23, %v1712_v21  ;;  %v4071_v26 = vpop.f32.mrb[19].mxu1 }
 0xbf1   :  { %v1891_v28 = vpop.f32.mrb[20].mxu0 }
 0xbf2   :  { %v1791_v29 = vadd.f32 %v4966_v5, %v1788_v24  ;;  %v4082_v30 = vpop.f32.mrb[21].mxu0  ;;  %v1892_v44 = vadd.f32 %v4890_v35, %v1891_v28 }
 0xbf4   :  { %4621 = vtanh.f32 %v1791_v29  ;;  %v3607_v39 = vmul.f32 -1.442695, %v1791_v29  ;;  %v3610_v61 = vmul.f32 -1.442695, %v1892_v44 }
 0xbf7   :  { %v1970_v32 = vpop.f32.mrb[20].mxu1 }
 0xbf8   :  { %v1974_v33 = vadd.f32 %v3611_v31, %v1970_v32  ;;  %v4093_v36 = vpop.f32.mrb[21].mxu1 }
 0xbfa   :  { %4623 = vtanh.f32 %v1974_v33  ;;  %v3613_v40 = vmul.f32 -1.442695, %v1974_v33 }
 0xbfb   :  { %4625 = vpow2.f32 %v3607_v39 }
 0xbfc   :  { %4627 = vpow2.f32 %v3613_v40 }
 0xbfe   :  { %v4622_v37 = vpop.eup %4621 }
 0xbff   :  { %1801 = vrot.lane.b32.xlu1 %v4622_v37, %s4735_s24  ;;  %v3622_v37 = vld [vmem:[%s5424_s0 + $0x10] sm:$0xff] }
 0xc04   :  { %v4624_v38 = vpop.eup %4623 }
 0xc05   :  { %1984 = vrot.lane.b32.xlu0 %v4624_v38, %s4735_s24  ;;  %v4626_v41 = vpop.eup %4625 }
 0xc06   :  { %v1795_v42 = vadd.f32 1.0, %v4626_v41  ;;  %v4628_v43 = vpop.eup %4627 }
 0xc07   :  { %v1978_v45 = vadd.f32 1.0, %v4628_v43 }
 0xc08   :  { %4629 = vrcp.f32 %v1795_v42 }
 0xc09   :  { %4631 = vrcp.f32 %v1978_v45 }
 0xc0a   :  { %4633 = vpow2.f32 %v3604_v58 }
 0xc0b   :  { %4635 = vpow2.f32 %v3610_v61 }
 0xc12   :  { %v4630_v46 = vpop.eup %4629 }
 0xc13   :  { %v4632_v49 = vpop.eup %4631 }
 0xc14   :  { %v4634_v62 = vpop.eup %4633 }
 0xc15   :  { %v1640_v51 = vadd.f32 1.0, %v4634_v62  ;;  %v4636_v1 = vpop.eup %4635 }
 0xc16   :  { %v1898_v57 = vadd.f32 1.0, %v4636_v1 }
 0xc17   :  { %4637 = vrcp.f32 %v1640_v51  ;;  %v5248_v51 = vld [vmem:[%s5426_s5] ss:$0 sm:$0xff] }
 0xc18   :  { %4639 = vrcp.f32 %v1898_v57 }
 0xc21   :  { %v4638_v3 = vpop.eup %4637 }
 0xc22   :  { %v1643_v6 = vsub.f32 %v5115_v2, %v4638_v3  ;;  %v4640_v10 = vpop.eup %4639 }
 0xc23   :  { %v1901_v35 = vsub.f32 %v5125_v7, %v4640_v10 }
 0xc24   :  { %v1799_v60 = vmul.f32 %v4630_v46, %v1643_v6 }
 0xc25   :  { %v1982_v14 = vmul.f32 %v4632_v49, %v1901_v35 }
 0xc71   :  { %v1802_v47 = vpop.permute.xlu1 %1801 }
 0xc72   :  { %v1804_v48 = vmul.f32 %v4630_v46, %v1802_v47 }
 0xc74   :  { %1806 = vrot.lane.b32.xlu1 %v1804_v48, %s4736_s7 }
 0xc77   :  { %v1985_v52 = vpop.permute.xlu0 %1984 }
 0xc78   :  { %v1987_v54 = vmul.f32 %v4632_v49, %v1985_v52 }
 0xc7a   :  { %1989 = vrot.lane.b32.xlu0 %v1987_v54, %s4736_s7 }
 0xce6   :  { %v1807_v63 = vpop.permute.xlu1 %1806 }
 0xce7   :  { %v5181_v11 = vadd.f32 %v1807_v63, %v1799_v60 }
 0xce9   :  { %4641 = vtanh.f32 %v5181_v11  ;;  %4103 = vmatmul.mubr.msk.f32.vlgmr.msra.gmra.mrb[22].mxu0 %vm69_vm1, %v5181_v11 }
 0xcea   :  { %4438 = vmatpush3.bf16.msra.mxu0 %v4928_v56  ;;  %4124 = vmatprep.mubr.msk.f32.mxu0 %vm4733_vm0, %v4734_v8 }
 0xceb   :  { %4439 = vmatprep.subr.bf16.mxu0 %v4732_v0 }
 0xcec   :  { %v1990_v2 = vpop.permute.xlu0 %1989 }
 0xced   :  { %v5191_v15 = vadd.f32 %v1990_v2, %v1982_v14 }
 0xcee   :  { %4441 = vmatpush3.bf16.msra.mxu0 %v4941_v59 }
 0xcef   :  { %4643 = vtanh.f32 %v5191_v15  ;;  %4448 = vmatprep.subr.bf16.mxu0 %v4732_v0 }
 0xcf3   :  { %v4642_v16 = vpop.eup %4641 }
 0xcf4   :  { %1812 = vrot.lane.b32.xlu1 %v4642_v16, %s4735_s24 }
 0xcf9   :  { %v4644_v7 = vpop.eup %4643 }
 0xcfa   :  { %1995 = vrot.lane.b32.xlu0 %v4644_v7, %s4735_s24 }
 0xd66   :  { %v1813_v17 = vpop.permute.xlu1 %1812 }
 0xd67   :  { %v1815_v18 = vmul.f32 %v4630_v46, %v1813_v17 }
 0xd69   :  { %1817 = vrot.lane.b32.xlu1 %v1815_v18, %s4735_s24 }
 0xd6c   :  { %v1996_v19 = vpop.permute.xlu0 %1995 }
 0xd6d   :  { %v1998_v20 = vmul.f32 %v4632_v49, %v1996_v19 }
 0xd6f   :  { %2152 = vrot.lane.b32.xlu0 %v1998_v20, %s4735_s24 }
 0xdbc   :  { %v5200_v21 = vpop.f32.mrb[22].mxu0 }
 0xdbd   :  { %v4104_v22 = vpop.f32.mrb[23].mxu0  ;;  %v2069_v61 = vadd.f32 %v4979_v34, %v5200_v21 }
 0xdbf   :  { %v3615_v62 = vmul.f32 -1.442695, %v2069_v61 }
 0xddb   :  { %v1818_v23 = vpop.permute.xlu1 %1817 }
 0xddc   :  { %3608 = vst.msk [vmem:[%s5431_s11 + $0x18] sm:$0xff] %vm69_vm1, %v1818_v23  ;;  %4114 = vmatmul.mubr.msk.f32.vlgmr.msra.gmra.mrb[22].mxu1 %vm69_vm1, %v1818_v23 }
 0xddd   :  { %4444 = vmatpush3.bf16.msra.mxu1 %v4808_v4  ;;  %4135 = vmatprep.mubr.msk.f32.mxu1 %vm4733_vm0, %v4734_v8 }
 0xdde   :  { %4445 = vmatprep.subr.bf16.mxu1 %v4732_v0 }
 0xde1   :  { %4447 = vmatpush3.bf16.msra.mxu1 %v4832_v12  ;;  %v2153_v24 = vpop.permute.xlu0 %2152 }
 0xde2   :  { %4125 = vmatmul.mubr.msk.f32.vlgmr.msra.gmra.mrb[24].mxu0 %vm69_vm1, %v2153_v24  ;;  %4454 = vmatprep.subr.bf16.mxu1 %v4732_v0 }
 0xde3   :  { %4450 = vmatpush3.bf16.msra.mxu0 %v4823_v9  ;;  %4146 = vmatprep.mubr.msk.f32.mxu0 %vm4733_vm0, %v4734_v8 }
 0xde4   :  { %4136 = vmatmul.mubr.msk.f32.vlgmr.msra.gmra.mrb[24].mxu1 %vm69_vm1, %v5191_v15  ;;  %4451 = vmatprep.subr.bf16.mxu0 %v4732_v0 }
 0xde5   :  { %4456 = vmatpush3.bf16.msra.mxu1 %v4907_v50  ;;  %4157 = vmatprep.mubr.msk.f32.mxu1 %vm4733_vm0, %v4734_v8 }
 0xde6   :  { %4457 = vmatprep.subr.bf16.mxu1 %v4732_v0 }
 0xde7   :  { %4453 = vmatpush3.bf16.msra.mxu0 %v4836_v13 }
 0xde8   :  { %4460 = vmatprep.subr.bf16.mxu0 %v4732_v0 }
 0xde9   :  { %4459 = vmatpush3.bf16.msra.mxu1 %v4919_v53 }
 0xdea   :  { %4147 = vmatmul.mubr.msk.f32.vlgmr.msra.gmra.mrb[26].mxu0 %vm69_vm1, %v2153_v24  ;;  %4466 = vmatprep.subr.bf16.mxu1 %v4732_v0 }
 0xdeb   :  { %4462 = vmatpush3.bf16.msra.mxu0 %v4867_v25  ;;  %4168 = vmatprep.mubr.msk.f32.mxu0 %vm4733_vm0, %v4734_v8 }
 0xdec   :  { %4463 = vmatprep.subr.bf16.mxu0 %v4732_v0 }
 0xdef   :  { %4465 = vmatpush3.bf16.msra.mxu0 %v4873_v27 }
 0xdf0   :  { %4472 = vmatprep.subr.bf16.mxu0 %v4732_v0 }
 0xeaf   :  { %v2147_v26 = vpop.f32.mrb[22].mxu1 }
 0xeb0   :  { %v4115_v28 = vpop.f32.mrb[23].mxu1 }
 0xeb5   :  { %v2222_v29 = vpop.f32.mrb[24].mxu0 }
 0xeb6   :  { %v2223_v30 = vadd.f32 %v2222_v29, %v2147_v26  ;;  %v4126_v31 = vpop.f32.mrb[25].mxu0 }
 0xeb7   :  { %v2326_v32 = vpop.f32.mrb[24].mxu1 }
 0xeb8   :  { %v2226_v33 = vadd.f32 %v4966_v5, %v2223_v30  ;;  %v4137_v36 = vpop.f32.mrb[25].mxu1  ;;  %v2327_v1 = vadd.f32 %v5248_v51, %v2326_v32 }
 0xeba   :  { %4645 = vtanh.f32 %v2226_v33  ;;  %v3618_v43 = vmul.f32 -1.442695, %v2226_v33  ;;  %v3621_v57 = vmul.f32 -1.442695, %v2327_v1 }
 0xebd   :  { %v2405_v38 = vpop.f32.mrb[26].mxu0 }
 0xebe   :  { %v2409_v39 = vadd.f32 %v3622_v37, %v2405_v38  ;;  %v4148_v40 = vpop.f32.mrb[27].mxu0  ;;  %v5309_v38 = vld [vmem:[%s5429_s8] ss:$0 sm:$0xff] }
 0xec0   :  { %4647 = vtanh.f32 %v2409_v39  ;;  %v3624_v45 = vmul.f32 -1.442695, %v2409_v39 }
 0xec1   :  { %4649 = vpow2.f32 %v3618_v43 }
 0xec2   :  { %4651 = vpow2.f32 %v3624_v45 }
 0xec4   :  { %v4646_v41 = vpop.eup %4645 }
 0xec5   :  { %2236 = vrot.lane.b32.xlu1 %v4646_v41, %s4735_s24  ;;  %v3633_v41 = vld [vmem:[%s5424_s0 + $0x8] sm:$0xff] }
 0xeca   :  { %v4648_v42 = vpop.eup %4647 }
 0xecb   :  { %2419 = vrot.lane.b32.xlu0 %v4648_v42, %s4735_s24  ;;  %v4650_v5 = vpop.eup %4649 }
 0xecc   :  { %v2230_v46 = vadd.f32 1.0, %v4650_v5  ;;  %v4652_v47 = vpop.eup %4651 }
 0xecd   :  { %v2413_v48 = vadd.f32 1.0, %v4652_v47 }
 0xece   :  { %4653 = vrcp.f32 %v2230_v46 }
 0xecf   :  { %4655 = vrcp.f32 %v2413_v48 }
 0xed0   :  { %4657 = vpow2.f32 %v3615_v62 }
 0xed1   :  { %4659 = vpow2.f32 %v3621_v57 }
 0xed8   :  { %v4654_v49 = vpop.eup %4653 }
 0xed9   :  { %v4656_v55 = vpop.eup %4655 }
 0xeda   :  { %v4658_v3 = vpop.eup %4657 }
 0xedb   :  { %v2075_v6 = vadd.f32 1.0, %v4658_v3  ;;  %v4660_v60 = vpop.eup %4659  ;;  %v5322_v3 = vld [vmem:[%s5430_s10] ss:$0 sm:$0xff] }
 0xedc   :  { %v2333_v10 = vadd.f32 1.0, %v4660_v60 }
 0xedd   :  { %4661 = vrcp.f32 %v2075_v6 }
 0xede   :  { %4663 = vrcp.f32 %v2333_v10 }
 0xee7   :  { %v4662_v63 = vpop.eup %4661 }
 0xee8   :  { %v2078_v34 = vsub.f32 %v5181_v11, %v4662_v63  ;;  %v4664_v14 = vpop.eup %4663 }
 0xee9   :  { %v2336_v7 = vsub.f32 %v5191_v15, %v4664_v14 }
 0xeea   :  { %v2234_v35 = vmul.f32 %v4654_v49, %v2078_v34 }
 0xeeb   :  { %v2417_v17 = vmul.f32 %v4656_v55, %v2336_v7 }
 0xf37   :  { %v2237_v52 = vpop.permute.xlu1 %2236 }
 0xf38   :  { %v2239_v54 = vmul.f32 %v4654_v49, %v2237_v52 }
 0xf3a   :  { %2241 = vrot.lane.b32.xlu1 %v2239_v54, %s4736_s7 }
 0xf3d   :  { %v2420_v58 = vpop.permute.xlu0 %2419 }
 0xf3e   :  { %v2422_v44 = vmul.f32 %v4656_v55, %v2420_v58 }
 0xf40   :  { %2424 = vrot.lane.b32.xlu0 %v2422_v44, %s4736_s7 }
 0xfac   :  { %v2242_v2 = vpop.permute.xlu1 %2241 }
 0xfad   :  { %v5252_v16 = vadd.f32 %v2242_v2, %v2234_v35 }
 0xfaf   :  { %4665 = vtanh.f32 %v5252_v16  ;;  %4158 = vmatmul.mubr.msk.f32.vlgmr.msra.gmra.mrb[26].mxu1 %vm69_vm1, %v5252_v16 }
 0xfb0   :  { %4468 = vmatpush3.bf16.msra.mxu1 %v4928_v56  ;;  %4179 = vmatprep.mubr.msk.f32.mxu1 %vm4733_vm0, %v4734_v8 }
 0xfb1   :  { %4469 = vmatprep.subr.bf16.mxu1 %v4732_v0 }
 0xfb2   :  { %v2425_v11 = vpop.permute.xlu0 %2424 }
 0xfb3   :  { %v5262_v18 = vadd.f32 %v2425_v11, %v2417_v17 }
 0xfb4   :  { %4471 = vmatpush3.bf16.msra.mxu1 %v4941_v59 }
 0xfb5   :  { %4667 = vtanh.f32 %v5262_v18  ;;  %4478 = vmatprep.subr.bf16.mxu1 %v4732_v0 }
 0xfb9   :  { %v4666_v19 = vpop.eup %4665 }
 0xfba   :  { %2247 = vrot.lane.b32.xlu1 %v4666_v19, %s4735_s24 }
 0xfbf   :  { %v4668_v15 = vpop.eup %4667 }
 0xfc0   :  { %2430 = vrot.lane.b32.xlu0 %v4668_v15, %s4735_s24 }
0x102c   :  { %v2248_v20 = vpop.permute.xlu1 %2247 }
0x102d   :  { %v2250_v21 = vmul.f32 %v4654_v49, %v2248_v20 }
0x102f   :  { %2252 = vrot.lane.b32.xlu1 %v2250_v21, %s4735_s24 }
0x1032   :  { %v2431_v22 = vpop.permute.xlu0 %2430 }
0x1033   :  { %v2433_v23 = vmul.f32 %v4656_v55, %v2431_v22 }
0x1035   :  { %2587 = vrot.lane.b32.xlu0 %v2433_v23, %s4735_s24 }
0x1082   :  { %v5271_v24 = vpop.f32.mrb[26].mxu1 }
0x1083   :  { %v4159_v26 = vpop.f32.mrb[27].mxu1  ;;  %v2504_v6 = vadd.f32 %v5322_v3, %v5271_v24 }
0x1085   :  { %v3626_v60 = vmul.f32 -1.442695, %v2504_v6 }
0x10a1   :  { %v2253_v28 = vpop.permute.xlu1 %2252 }
0x10a2   :  { %3619 = vst.msk [vmem:[%s5431_s11 + $0x20] sm:$0xff] %vm69_vm1, %v2253_v28  ;;  %4169 = vmatmul.mubr.msk.f32.vlgmr.msra.gmra.mrb[28].mxu0 %vm69_vm1, %v2253_v28 }
0x10a3   :  { %4474 = vmatpush3.bf16.msra.mxu0 %v4808_v4  ;;  %4190 = vmatprep.mubr.msk.f32.mxu0 %vm4733_vm0, %v4734_v8 }
0x10a4   :  { %4475 = vmatprep.subr.bf16.mxu0 %v4732_v0 }
0x10a7   :  { %4477 = vmatpush3.bf16.msra.mxu0 %v4832_v12  ;;  %v2588_v29 = vpop.permute.xlu0 %2587 }
0x10a8   :  { %4180 = vmatmul.mubr.msk.f32.vlgmr.msra.gmra.mrb[28].mxu1 %vm69_vm1, %v2588_v29  ;;  %4484 = vmatprep.subr.bf16.mxu0 %v4732_v0 }
0x10a9   :  { %4480 = vmatpush3.bf16.msra.mxu1 %v4823_v9  ;;  %4201 = vmatprep.mubr.msk.f32.mxu1 %vm4733_vm0, %v4734_v8 }
0x10aa   :  { %4191 = vmatmul.mubr.msk.f32.vlgmr.msra.gmra.mrb[30].mxu0 %vm69_vm1, %v5262_v18  ;;  %4481 = vmatprep.subr.bf16.mxu1 %v4732_v0 }
0x10ab   :  { %4486 = vmatpush3.bf16.msra.mxu0 %v4907_v50  ;;  %4212 = vmatprep.mubr.msk.f32.mxu0 %vm4733_vm0, %v4734_v8 }
0x10ac   :  { %4487 = vmatprep.subr.bf16.mxu0 %v4732_v0 }
0x10ad   :  { %4483 = vmatpush3.bf16.msra.mxu1 %v4836_v13 }
0x10ae   :  { %4490 = vmatprep.subr.bf16.mxu1 %v4732_v0 }
0x10af   :  { %4489 = vmatpush3.bf16.msra.mxu0 %v4919_v53 }
0x10b0   :  { %4202 = vmatmul.mubr.msk.f32.vlgmr.msra.gmra.mrb[30].mxu1 %vm69_vm1, %v2588_v29  ;;  %4496 = vmatprep.subr.bf16.mxu0 %v4732_v0 }
0x10b1   :  { %4492 = vmatpush3.bf16.msra.mxu1 %v4867_v25  ;;  %4223 = vmatprep.mubr.msk.f32.mxu1 %vm4733_vm0, %v4734_v8 }
0x10b2   :  { %4493 = vmatprep.subr.bf16.mxu1 %v4732_v0 }
0x10b5   :  { %4495 = vmatpush3.bf16.msra.mxu1 %v4873_v27 }
0x10b6   :  { %4502 = vmatprep.subr.bf16.mxu1 %v4732_v0 }
0x1175   :  { %v2582_v30 = vpop.f32.mrb[28].mxu0 }
0x1176   :  { %v4170_v31 = vpop.f32.mrb[29].mxu0 }
0x117b   :  { %v2657_v32 = vpop.f32.mrb[28].mxu1 }
0x117c   :  { %v2658_v33 = vadd.f32 %v2657_v32, %v2582_v30  ;;  %v4181_v36 = vpop.f32.mrb[29].mxu1 }
0x117d   :  { %v2761_v37 = vpop.f32.mrb[30].mxu0 }
0x117e   :  { %v2661_v39 = vadd.f32 %v5309_v38, %v2658_v33  ;;  %v4192_v40 = vpop.f32.mrb[31].mxu0  ;;  %v2762_v10 = vadd.f32 %v5248_v51, %v2761_v37 }
0x1180   :  { %4669 = vtanh.f32 %v2661_v39  ;;  %v3629_v47 = vmul.f32 -1.442695, %v2661_v39  ;;  %v3632_v63 = vmul.f32 -1.442695, %v2762_v10 }
0x1183   :  { %v2840_v42 = vpop.f32.mrb[30].mxu1 }
0x1184   :  { %v2844_v43 = vadd.f32 %v3633_v41, %v2840_v42  ;;  %v4203_v45 = vpop.f32.mrb[31].mxu1 }
0x1186   :  { %4671 = vtanh.f32 %v2844_v43  ;;  %v3635_v48 = vmul.f32 -1.442695, %v2844_v43 }
0x1187   :  { %4673 = vpow2.f32 %v3629_v47 }
0x1188   :  { %4675 = vpow2.f32 %v3635_v48 }
0x118a   :  { %v4670_v5 = vpop.eup %4669 }
0x118b   :  { %2671 = vrot.lane.b32.xlu1 %v4670_v5, %s4735_s24 }
0x1190   :  { %v4672_v46 = vpop.eup %4671 }
0x1191   :  { %2854 = vrot.lane.b32.xlu0 %v4672_v46, %s4735_s24  ;;  %v4674_v49 = vpop.eup %4673 }
0x1192   :  { %v2665_v52 = vadd.f32 1.0, %v4674_v49  ;;  %v4676_v54 = vpop.eup %4675 }
0x1193   :  { %v2848_v55 = vadd.f32 1.0, %v4676_v54 }
0x1194   :  { %4677 = vrcp.f32 %v2665_v52 }
0x1195   :  { %4679 = vrcp.f32 %v2848_v55 }
0x1196   :  { %4681 = vpow2.f32 %v3626_v60 }
0x1197   :  { %4683 = vpow2.f32 %v3632_v63 }
0x119e   :  { %v4678_v58 = vpop.eup %4677 }
0x119f   :  { %v4680_v62 = vpop.eup %4679 }
0x11a0   :  { %v4682_v34 = vpop.eup %4681 }
0x11a1   :  { %v2510_v35 = vadd.f32 1.0, %v4682_v34  ;;  %v4684_v14 = vpop.eup %4683 }
0x11a2   :  { %v2768_v2 = vadd.f32 1.0, %v4684_v14 }
0x11a3   :  { %4685 = vrcp.f32 %v2510_v35 }
0x11a4   :  { %4687 = vrcp.f32 %v2768_v2 }
0x11ad   :  { %v4686_v7 = vpop.eup %4685 }
0x11ae   :  { %v2513_v17 = vsub.f32 %v5252_v16, %v4686_v7  ;;  %v4688_v19 = vpop.eup %4687 }
0x11af   :  { %v2771_v21 = vsub.f32 %v5262_v18, %v4688_v19 }
0x11b0   :  { %v2669_v11 = vmul.f32 %v4678_v58, %v2513_v17 }
0x11b1   :  { %v2852_v22 = vmul.f32 %v4680_v62, %v2771_v21 }
0x11fd   :  { %v2672_v44 = vpop.permute.xlu1 %2671 }
0x11fe   :  { %v2674_v61 = vmul.f32 %v4678_v58, %v2672_v44 }
0x1200   :  { %2676 = vrot.lane.b32.xlu1 %v2674_v61, %s4736_s7 }
0x1203   :  { %v2855_v1 = vpop.permute.xlu0 %2854 }
0x1204   :  { %v2857_v57 = vmul.f32 %v4680_v62, %v2855_v1 }
0x1206   :  { %2859 = vrot.lane.b32.xlu0 %v2857_v57, %s4736_s7 }
0x1272   :  { %v2677_v15 = vpop.permute.xlu1 %2676 }
0x1273   :  { %v5328_v20 = vadd.f32 %v2677_v15, %v2669_v11 }
0x1275   :  { %4689 = vtanh.f32 %v5328_v20  ;;  %4213 = vmatmul.mubr.msk.f32.vlgmr.msra.gmra.mrb[32].mxu0 %vm69_vm1, %v5328_v20 }
0x1276   :  { %4498 = vmatpush3.bf16.msra.mxu0 %v4928_v56  ;;  %4234 = vmatprep.mubr.msk.f32.mxu0 %vm4733_vm0, %v4734_v8 }
0x1277   :  { %4499 = vmatprep.subr.bf16.mxu0 %v4732_v0 }
0x1278   :  { %v2860_v16 = vpop.permute.xlu0 %2859 }
0x1279   :  { %v5338_v23 = vadd.f32 %v2860_v16, %v2852_v22 }
0x127a   :  { %4501 = vmatpush3.bf16.msra.mxu0 %v4941_v59 }
0x127b   :  { %4691 = vtanh.f32 %v5338_v23  ;;  %4508 = vmatprep.subr.bf16.mxu0 %v4732_v0 }
0x127f   :  { %v4690_v24 = vpop.eup %4689 }
0x1280   :  { %2682 = vrot.lane.b32.xlu1 %v4690_v24, %s4735_s24 }
0x1285   :  { %v4692_v18 = vpop.eup %4691 }
0x1286   :  { %2865 = vrot.lane.b32.xlu0 %v4692_v18, %s4735_s24 }
0x12f2   :  { %v2683_v26 = vpop.permute.xlu1 %2682 }
0x12f3   :  { %v2685_v28 = vmul.f32 %v4678_v58, %v2683_v26 }
0x12f5   :  { %2687 = vrot.lane.b32.xlu1 %v2685_v28, %s4735_s24 }
0x12f8   :  { %v2866_v29 = vpop.permute.xlu0 %2865 }
0x12f9   :  { %v2868_v30 = vmul.f32 %v4680_v62, %v2866_v29 }
0x12fb   :  { %3022 = vrot.lane.b32.xlu0 %v2868_v30, %s4735_s24 }
0x1348   :  { %v5347_v31 = vpop.f32.mrb[32].mxu0 }
0x1349   :  { %v4214_v32 = vpop.f32.mrb[33].mxu0  ;;  %v2939_v62 = vadd.f32 %v5322_v3, %v5347_v31 }
0x134b   :  { %v3637_v1 = vmul.f32 -1.442695, %v2939_v62 }
0x1367   :  { %v2688_v33 = vpop.permute.xlu1 %2687 }
0x1368   :  { %3630 = vst.msk [vmem:[%s5431_s11 + $0x28] sm:$0xff] %vm69_vm1, %v2688_v33  ;;  %4224 = vmatmul.mubr.msk.f32.vlgmr.msra.gmra.mrb[32].mxu1 %vm69_vm1, %v2688_v33 }
0x1369   :  { %4504 = vmatpush3.bf16.msra.mxu1 %v4808_v4  ;;  %4245 = vmatprep.mubr.msk.f32.mxu1 %vm4733_vm0, %v4734_v8 }
0x136a   :  { %4505 = vmatprep.subr.bf16.mxu1 %v4732_v0 }
0x136d   :  { %4507 = vmatpush3.bf16.msra.mxu1 %v4832_v12  ;;  %v3023_v36 = vpop.permute.xlu0 %3022 }
0x136e   :  { %4235 = vmatmul.mubr.msk.f32.vlgmr.msra.gmra.mrb[34].mxu0 %vm69_vm1, %v3023_v36  ;;  %4514 = vmatprep.subr.bf16.mxu1 %v4732_v0 }
0x136f   :  { %4510 = vmatpush3.bf16.msra.mxu0 %v4823_v9  ;;  %4256 = vmatprep.mubr.msk.f32.mxu0 %vm4733_vm0, %v4734_v8 }
0x1370   :  { %4246 = vmatmul.mubr.msk.f32.vlgmr.msra.gmra.mrb[34].mxu1 %vm69_vm1, %v5338_v23  ;;  %4511 = vmatprep.subr.bf16.mxu0 %v4732_v0 }
0x1371   :  { %4516 = vmatpush3.bf16.msra.mxu1 %v4907_v50  ;;  %4267 = vmatprep.mubr.msk.f32.mxu1 %vm4733_vm0, %v4734_v8 }
0x1372   :  { %4517 = vmatprep.subr.bf16.mxu1 %v4732_v0 }
0x1373   :  { %4513 = vmatpush3.bf16.msra.mxu0 %v4836_v13 }
0x1374   :  { %4520 = vmatprep.subr.bf16.mxu0 %v4732_v0 }
0x1375   :  { %4519 = vmatpush3.bf16.msra.mxu1 %v4919_v53 }
0x1376   :  { %4257 = vmatmul.mubr.msk.f32.vlgmr.msra.gmra.mrb[36].mxu0 %vm69_vm1, %v3023_v36  ;;  %4526 = vmatprep.subr.bf16.mxu1 %v4732_v0 }
0x1377   :  { %4522 = vmatpush3.bf16.msra.mxu0 %v4867_v25  ;;  %4278 = vmatprep.mubr.msk.f32.mxu0 %vm4733_vm0, %v4734_v8  ;;  %v3207_v25 = vld [vmem:[%s5424_s0] sm:$0xff] }
0x1378   :  { %4523 = vmatprep.subr.bf16.mxu0 %v4732_v0 }
0x137b   :  { %4525 = vmatpush3.bf16.msra.mxu0 %v4873_v27 }
0x143b   :  { %v3017_v4 = vpop.f32.mrb[32].mxu1 }
0x143c   :  { %v4225_v9 = vpop.f32.mrb[33].mxu1 }
0x1441   :  { %v3092_v12 = vpop.f32.mrb[34].mxu0 }
0x1442   :  { %v3093_v13 = vadd.f32 %v3092_v12, %v3017_v4  ;;  %v4236_v50 = vpop.f32.mrb[35].mxu0 }
0x1443   :  { %v3196_v37 = vpop.f32.mrb[34].mxu1 }
0x1444   :  { %v3096_v53 = vadd.f32 %v5309_v38, %v3093_v13  ;;  %v4247_v39 = vpop.f32.mrb[35].mxu1  ;;  %v3197_v57 = vadd.f32 %v5248_v51, %v3196_v37 }
0x1446   :  { %4693 = vtanh.f32 %v3096_v53  ;;  %v3640_v45 = vmul.f32 -1.442695, %v3096_v53  ;;  %v3643_v6 = vmul.f32 -1.442695, %v3197_v57 }
0x1449   :  { %v3274_v40 = vpop.f32.mrb[36].mxu0 }
0x144a   :  { %v3278_v41 = vadd.f32 %v3274_v40, %v3207_v25  ;;  %v4258_v42 = vpop.f32.mrb[37].mxu0 }
0x144c   :  { %4695 = vtanh.f32 %v3278_v41  ;;  %v3645_v5 = vmul.f32 -1.442695, %v3278_v41 }
0x144d   :  { %4697 = vpow2.f32 %v3640_v45 }
0x144e   :  { %4699 = vpow2.f32 %v3645_v5 }
0x1450   :  { %v4694_v43 = vpop.eup %4693 }
0x1451   :  { %3106 = vrot.lane.b32.xlu0 %v4694_v43, %s4735_s24 }
0x1456   :  { %v4696_v27 = vpop.eup %4695 }
0x1457   :  { %3288 = vrot.lane.b32.xlu1 %v4696_v27, %s4735_s24  ;;  %v4698_v46 = vpop.eup %4697 }
0x1458   :  { %v3100_v47 = vadd.f32 1.0, %v4698_v46  ;;  %v4700_v48 = vpop.eup %4699 }
0x1459   :  { %v3282_v49 = vadd.f32 1.0, %v4700_v48 }
0x145a   :  { %4701 = vrcp.f32 %v3100_v47 }
0x145b   :  { %4703 = vrcp.f32 %v3282_v49 }
0x145c   :  { %4705 = vpow2.f32 %v3637_v1 }
0x145d   :  { %4707 = vpow2.f32 %v3643_v6 }
0x1464   :  { %v4702_v52 = vpop.eup %4701 }
0x1465   :  { %v4704_v58 = vpop.eup %4703 }
0x1466   :  { %v4706_v60 = vpop.eup %4705 }
0x1467   :  { %v2945_v10 = vadd.f32 1.0, %v4706_v60  ;;  %v4708_v63 = vpop.eup %4707 }
0x1468   :  { %v3203_v34 = vadd.f32 1.0, %v4708_v63 }
0x1469   :  { %4709 = vrcp.f32 %v2945_v10 }
0x146a   :  { %4711 = vrcp.f32 %v3203_v34 }
0x1473   :  { %v4710_v35 = vpop.eup %4709 }
0x1474   :  { %v2948_v14 = vsub.f32 %v5328_v20, %v4710_v35  ;;  %v4712_v7 = vpop.eup %4711 }
0x1475   :  { %v3206_v51 = vsub.f32 %v5338_v23, %v4712_v7 }
0x1476   :  { %v3104_v2 = vmul.f32 %v4702_v52, %v2948_v14 }
0x1477   :  { %v3286_v19 = vmul.f32 %v4704_v58, %v3206_v51 }
0x14c3   :  { %v3107_v54 = vpop.permute.xlu0 %3106 }
0x14c4   :  { %v3109_v55 = vmul.f32 %v4702_v52, %v3107_v54 }
0x14c6   :  { %3111 = vrot.lane.b32.xlu0 %v3109_v55, %s4736_s7 }
0x14c9   :  { %v3289_v44 = vpop.permute.xlu1 %3288 }
0x14ca   :  { %v3291_v61 = vmul.f32 %v4704_v58, %v3289_v44 }
0x14cc   :  { %3293 = vrot.lane.b32.xlu1 %v3291_v61, %s4736_s7 }
0x1538   :  { %v3112_v17 = vpop.permute.xlu0 %3111 }
0x1539   :  { %v3114_v11 = vadd.f32 %v3112_v17, %v3104_v2 }
0x153b   :  { %4713 = vtanh.f32 %v3114_v11  ;;  %4268 = vmatmul.mubr.msk.f32.vlgmr.msra.gmra.mrb[36].mxu1 %vm69_vm1, %v3114_v11 }
0x153c   :  { %4528 = vmatpush3.bf16.msra.mxu1 %v4928_v56  ;;  %4289 = vmatprep.mubr.msk.f32.mxu1 %vm4733_vm0, %v4734_v8 }
0x153d   :  { %4529 = vmatprep.subr.bf16.mxu1 %v4732_v0 }
0x153e   :  { %v3294_v15 = vpop.permute.xlu1 %3293 }
0x153f   :  { %v3296_v21 = vadd.f32 %v3294_v15, %v3286_v19 }
0x1540   :  { %4531 = vmatpush3.bf16.msra.mxu1 %v4941_v59 }
0x1541   :  { %4715 = vtanh.f32 %v3296_v21 }
0x1545   :  { %v4714_v20 = vpop.eup %4713 }
0x1546   :  { %3117 = vrot.lane.b32.xlu0 %v4714_v20, %s4735_s24 }
0x154b   :  { %v4716_v22 = vpop.eup %4715 }
0x154c   :  { %3299 = vrot.lane.b32.xlu1 %v4716_v22, %s4735_s24 }
0x15b8   :  { %v3118_v16 = vpop.permute.xlu0 %3117 }
0x15b9   :  { %v3120_v23 = vmul.f32 %v4702_v52, %v3118_v16 }
0x15bb   :  { %3122 = vrot.lane.b32.xlu0 %v3120_v23, %s4735_s24 }
0x15be   :  { %v3300_v56 = vpop.permute.xlu1 %3299 }
0x15bf   :  { %v3302_v8 = vmul.f32 %v4704_v58, %v3300_v56 }
0x15c1   :  { %3456 = vrot.lane.b32.xlu1 %v3302_v8, %s4735_s24 }
0x160e   :  { %v3372_v0 = vpop.f32.mrb[36].mxu1 }
0x160f   :  { %v4269_v24 = vpop.f32.mrb[37].mxu1  ;;  %v3373_v37 = vadd.f32 %v5322_v3, %v3372_v0 }
0x1611   :  { %v3647_v53 = vmul.f32 -1.442695, %v3373_v37 }
0x162d   :  { %v3123_v18 = vpop.permute.xlu0 %3122 }
0x162e   :  { %3641 = vst.msk [vmem:[%s5431_s11 + $0x30] sm:$0xff] %vm69_vm1, %v3123_v18  ;;  %4279 = vmatmul.mubr.msk.f32.vlgmr.msra.gmra.mrb[38].mxu0 %vm69_vm1, %v3123_v18 }
0x1633   :  { %v3457_v59 = vpop.permute.xlu1 %3456 }
0x1634   :  { %4290 = vmatmul.mubr.msk.f32.vlgmr.msra.gmra.mrb[38].mxu1 %vm69_vm1, %v3457_v59 }
0x1701   :  { %v3451_v26 = vpop.f32.mrb[38].mxu0 }
0x1702   :  { %v4280_v28 = vpop.f32.mrb[39].mxu0 }
0x1707   :  { %v3526_v29 = vpop.f32.mrb[38].mxu1 }
0x1708   :  { %v3527_v30 = vadd.f32 %v3526_v29, %v3451_v26  ;;  %v4291_v31 = vpop.f32.mrb[39].mxu1 }
0x170a   :  { %v3530_v32 = vadd.f32 %v5309_v38, %v3527_v30 }
0x170c   :  { %4717 = vtanh.f32 %v3530_v32  ;;  %v3650_v36 = vmul.f32 -1.442695, %v3530_v32 }
0x170e   :  { %4719 = vpow2.f32 %v3650_v36 }
0x1716   :  { %v4718_v33 = vpop.eup %4717 }
0x1717   :  { %3540 = vrot.lane.b32.xlu0 %v4718_v33, %s4735_s24 }
0x1718   :  { %v4720_v4 = vpop.eup %4719 }
0x1719   :  { %v3534_v9 = vadd.f32 1.0, %v4720_v4 }
0x171b   :  { %4721 = vrcp.f32 %v3534_v9 }
0x171c   :  { %4723 = vpow2.f32 %v3647_v53 }
0x1725   :  { %v4722_v12 = vpop.eup %4721 }
0x1726   :  { %v4724_v39 = vpop.eup %4723 }
0x1727   :  { %v3379_v38 = vadd.f32 1.0, %v4724_v39 }
0x1729   :  { %4725 = vrcp.f32 %v3379_v38 }
0x1733   :  { %v4726_v25 = vpop.eup %4725 }
0x1734   :  { %v3382_v40 = vsub.f32 %v3114_v11, %v4726_v25 }
0x1736   :  { %v3538_v41 = vmul.f32 %v4722_v12, %v3382_v40 }
0x1789   :  { %v3541_v13 = vpop.permute.xlu0 %3540 }
0x178a   :  { %v3543_v50 = vmul.f32 %v4722_v12, %v3541_v13 }
0x178c   :  { %3545 = vrot.lane.b32.xlu1 %v3543_v50, %s4736_s7 }
0x17fe   :  { %v3546_v42 = vpop.permute.xlu1 %3545 }
0x17ff   :  { %v3548_v43 = vadd.f32 %v3546_v42, %v3538_v41 }
0x1801   :  { %4727 = vtanh.f32 %v3548_v43 }
0x180b   :  { %v4728_v27 = vpop.eup %4727 }
0x180c   :  { %3551 = vrot.lane.b32.xlu0 %v4728_v27, %s4735_s24 }
0x187e   :  { %v3552_v45 = vpop.permute.xlu0 %3551 }
0x187f   :  { %v3554_v5 = vmul.f32 %v4722_v12, %v3552_v45 }
0x1881   :  { %3556 = vrot.lane.b32.xlu1 %v3554_v5, %s4735_s24 }
0x18f3   :  { %v3557_v46 = vpop.permute.xlu1 %3556 }
0x18f4   :  { %3651 = vst.msk [vmem:[%s5431_s11 + $0x38] sm:$0xff] %vm69_vm1, %v3557_v46 }

</bundles_post_ra>
